<compile_context>
chip_gen: v7x
topology: tpu7x:2x2x1
jax: 0.10.0
libtpu: 0.0.40
codegen_flags: <defaults>
</compile_context>

<pallas_src>
import math

import jax
import jax.numpy as jnp
from jax import lax
from jax.experimental import pallas as pl
from jax.experimental.pallas import tpu as pltpu


def _round_up(x, m):
    return ((x + m - 1) // m) * m


def _pick_tile(n, preferred):
    for t in preferred:
        if n % t == 0:
            return t
    return n


# -----------------------------------------------------------------------------
# Fused kernel: head projections + flash attention (online softmax over key
# blocks) + distributed output projection + residual + LayerNormalization.
# Grid: (batch, q_block, k_block); k_block is the "arbitrary" reduction axis.
# -----------------------------------------------------------------------------
def _make_fused_mha_kernel(n_head, d_model, tq, eps, apply_ln, mm_dtype,
                           exact_recip, unroll_heads):
    def kernel(q_ref, k_ref, v_ref, mask_ref,
               wq_ref, wk_ref, wv_ref, wp_ref, bp_ref, g_ref, b2_ref,
               o_ref, qp_sc, m_sc, l_sc, acc_sc):
        ki = pl.program_id(2)
        nk = pl.num_programs(2)

        # ---- per-(batch, q-block) init: project Q once, reset m/l/acc --------
        @pl.when(ki == 0)
        def _init():
            q_in = q_ref[0].astype(mm_dtype)                    # (tq, d_model)

            def proj_q(h, carry):
                # (tq, d_model) @ (d_model, dk_pad) — scale already folded in.
                qp_sc[h] = jnp.dot(q_in, wq_ref[h],
                                   preferred_element_type=jnp.float32)
                return carry

            lax.fori_loop(0, n_head, proj_q, 0, unroll=unroll_heads)
            m_sc[...] = jnp.full(m_sc.shape, -jnp.inf, m_sc.dtype)
            l_sc[...] = jnp.zeros(l_sc.shape, l_sc.dtype)
            acc_sc[...] = jnp.zeros(acc_sc.shape, acc_sc.dtype)

        # ---- online-softmax update for this key block, all heads -------------
        masked = mask_ref[0] != 0                               # (tq, tk) bool
        k_in = k_ref[0].astype(mm_dtype)                        # (tk, d_model)
        v_in = v_ref[0].astype(mm_dtype)

        def attend(h, carry):
            kh = jnp.dot(k_in, wk_ref[h],
                         preferred_element_type=jnp.float32).astype(mm_dtype)
            vh = jnp.dot(v_in, wv_ref[h],
                         preferred_element_type=jnp.float32).astype(mm_dtype)
            qh = qp_sc[h].astype(mm_dtype)                      # (tq, dk_pad)

            # Contract over the (padded) head dim without materializing kh.T.
            logits = lax.dot_general(qh, kh, (((1,), (1,)), ((), ())),
                                     preferred_element_type=jnp.float32)
            logits = jnp.where(masked, -1e30, logits)           # (tq, tk)

            m_prev = m_sc[h]                                    # (tq, 1)
            l_prev = l_sc[h]
            a_prev = acc_sc[h]                                  # (tq, dv_pad)

            m_new = jnp.maximum(m_prev,
                                jnp.max(logits, axis=-1, keepdims=True))
            alpha = jnp.exp(m_prev - m_new)
            p = jnp.exp(logits - m_new)

            m_sc[h] = m_new
            l_sc[h] = alpha * l_prev + jnp.sum(p, axis=-1, keepdims=True)
            acc_sc[h] = alpha * a_prev + jnp.dot(
                p.astype(mm_dtype), vh, preferred_element_type=jnp.float32)
            return carry

        lax.fori_loop(0, n_head, attend, 0, unroll=unroll_heads)

        # ---- epilogue on the last key block -----------------------------------
        @pl.when(ki == nk - 1)
        def _finish():
            residual = q_ref[0]                                 # (tq, d_model) f32

            def proj_out(h, y):
                inv_l = pl.reciprocal(l_sc[h], approx=not exact_recip)
                ctx = (acc_sc[h] * inv_l).astype(mm_dtype)      # (tq, dv_pad)
                return y + jnp.dot(ctx, wp_ref[h],
                                   preferred_element_type=jnp.float32)

            y0 = jnp.zeros((tq, d_model), jnp.float32) + bp_ref[...]
            y = lax.fori_loop(0, n_head, proj_out, y0, unroll=unroll_heads)
            z = y + residual                                    # dropout = identity

            if apply_ln:
                mu = jnp.mean(z, axis=-1, keepdims=True)
                # torch.std is the unbiased (N-1) estimator; eps added to sigma.
                var = jnp.sum((z - mu) ** 2, axis=-1, keepdims=True) / (d_model - 1)
                sigma = jnp.sqrt(var)
                inv_sigma = pl.reciprocal(sigma + eps, approx=not exact_recip)
                z = (z - mu) * inv_sigma * g_ref[...] + b2_ref[...]

            o_ref[0] = z

    return kernel


# -----------------------------------------------------------------------------
# Wrapper
# -----------------------------------------------------------------------------
def multi_head_attention(q, k, v, attn_mask, params, eps=0.001,
                         use_bf16_matmul=True):
    n_head, d_model, d_k = params["w_qs"].shape
    d_v = params["w_vs"].shape[2]
    mb, len_q, _ = q.shape
    _, len_k, _ = k.shape
    assert attn_mask.shape == (mb, len_q, len_k)

    mm_dtype = jnp.bfloat16 if use_bf16_matmul else jnp.float32
    scale = 1.0 / math.sqrt(d_model)   # ScaledDotProductAttention.temper = d_model**0.5

    # Pad each head's feature dims to 128-lane multiples so per-head accesses are
    # whole vreg lane groups / leading-axis indices.  The zero padding is inert
    # through QK^T, PV and the output projection.  Note: the softmax scale is
    # folded into w_qs *before* the mm_dtype cast (couples weight quantization to
    # the softmax temperature — fine numerically, but keep in mind if the scale
    # definition ever changes).
    dk_pad = max(128, _round_up(d_k, 128))
    dv_pad = max(128, _round_up(d_v, 128))

    wq_p = jnp.zeros((n_head, d_model, dk_pad), jnp.float32)
    wq_p = wq_p.at[:, :, :d_k].set(params["w_qs"] * scale)
    wk_p = jnp.zeros((n_head, d_model, dk_pad), jnp.float32)
    wk_p = wk_p.at[:, :, :d_k].set(params["w_ks"])
    wv_p = jnp.zeros((n_head, d_model, dv_pad), jnp.float32)
    wv_p = wv_p.at[:, :, :d_v].set(params["w_vs"])
    # nn.Linear(n_head*d_v, d_model): w_proj holds W^T (n_head*d_v, d_model);
    # split into per-head (dv_pad, d_model) blocks for the distributed projection.
    wp_p = jnp.zeros((n_head, dv_pad, d_model), jnp.float32)
    wp_p = wp_p.at[:, :d_v, :].set(params["w_proj"].reshape(n_head, d_v, d_model))

    wq_p = wq_p.astype(mm_dtype)
    wk_p = wk_p.astype(mm_dtype)
    wv_p = wv_p.astype(mm_dtype)
    wp_p = wp_p.astype(mm_dtype)

    # int8 mask: same semantics (nonzero == masked), 4x less HBM traffic.
    mask_i8 = attn_mask.astype(jnp.int8)

    # Flash tiles: q blocks of tq rows, online softmax over tk-key blocks
    # (tk preference 512/256 keeps the PV contraction MXU-deep on v6e/v7x).
    tq = _pick_tile(len_q, (128,))
    tk = _pick_tile(len_k, (512, 256, 128))
    n_qblk = len_q // tq
    n_kblk = len_k // tk

    # LayerNormalization short-circuits when z.size(1) == 1 (static shape branch).
    apply_ln = len_q != 1

    kernel = _make_fused_mha_kernel(
        n_head, d_model, tq, eps, apply_ln, mm_dtype,
        exact_recip=not use_bf16_matmul, unroll_heads=(n_head <= 8))

    out = pl.pallas_call(
        kernel,
        out_shape=jax.ShapeDtypeStruct((mb, len_q, d_model), jnp.float32),
        grid=(mb, n_qblk, n_kblk),
        in_specs=[
            pl.BlockSpec((1, tq, d_model), lambda b, qi, ki: (b, qi, 0)),   # q (+residual)
            pl.BlockSpec((1, tk, d_model), lambda b, qi, ki: (b, ki, 0)),   # k
            pl.BlockSpec((1, tk, d_model), lambda b, qi, ki: (b, ki, 0)),   # v
            pl.BlockSpec((1, tq, tk),      lambda b, qi, ki: (b, qi, ki)),  # mask (int8)
            pl.BlockSpec((n_head, d_model, dk_pad), lambda b, qi, ki: (0, 0, 0)),  # w_qs (scaled, padded)
            pl.BlockSpec((n_head, d_model, dk_pad), lambda b, qi, ki: (0, 0, 0)),  # w_ks (padded)
            pl.BlockSpec((n_head, d_model, dv_pad), lambda b, qi, ki: (0, 0, 0)),  # w_vs (padded)
            pl.BlockSpec((n_head, dv_pad, d_model), lambda b, qi, ki: (0, 0, 0)),  # proj W^T (per head)
            pl.BlockSpec((1, d_model), lambda b, qi, ki: (0, 0)),           # proj bias
            pl.BlockSpec((1, d_model), lambda b, qi, ki: (0, 0)),           # ln gamma (a_2)
            pl.BlockSpec((1, d_model), lambda b, qi, ki: (0, 0)),           # ln beta (b_2)
        ],
        out_specs=pl.BlockSpec((1, tq, d_model), lambda b, qi, ki: (b, qi, 0)),
        scratch_shapes=[
            pltpu.VMEM((n_head, tq, dk_pad), jnp.float32),   # cached Q projections
            pltpu.VMEM((n_head, tq, 1), jnp.float32),        # running row max m
            pltpu.VMEM((n_head, tq, 1), jnp.float32),        # running denom l
            pltpu.VMEM((n_head, tq, dv_pad), jnp.float32),   # running PV accumulator
        ],
        compiler_params=pltpu.CompilerParams(
            dimension_semantics=("parallel", "parallel", "arbitrary"),
            vmem_limit_bytes=48 * 1024 * 1024),   # v7x-safe (64 MiB physical)
    )(q, k, v, mask_i8, wq_p, wk_p, wv_p, wp_p,
      params["b_proj"], params["ln_gamma"], params["ln_beta"])

    return out


# -----------------------------------------------------------------------------
# Pure-JAX reference (f32, full module semantics) for validation.
# -----------------------------------------------------------------------------
def reference_mha(q, k, v, attn_mask, params, eps=0.001):
    n_head, d_model, d_k = params["w_qs"].shape
    d_v = params["w_vs"].shape[2]
    mb, len_q, _ = q.shape
    hi = jax.lax.Precision.HIGHEST
    scale = 1.0 / math.sqrt(d_model)

    q_s = jnp.einsum("bld,hdk->bhlk", q, params["w_qs"], precision=hi)
    k_s = jnp.einsum("bld,hdk->bhlk", k, params["w_ks"], precision=hi)
    v_s = jnp.einsum("bld,hdk->bhlk", v, params["w_vs"], precision=hi)

    logits = jnp.einsum("bhqd,bhkd->bhqk", q_s, k_s, precision=hi) * scale
    logits = jnp.where(attn_mask[:, None] != 0, -1e30, logits)
    p = jax.nn.softmax(logits, axis=-1)
    ctx = jnp.einsum("bhqk,bhkd->bhqd", p, v_s, precision=hi)
    concat = jnp.transpose(ctx, (0, 2, 1, 3)).reshape(mb, len_q, n_head * d_v)

    y = jnp.einsum("blf,fd->bld", concat, params["w_proj"], precision=hi)
    y = y + params["b_proj"]
    z = y + q
    if len_q != 1:
        mu = jnp.mean(z, axis=-1, keepdims=True)
        sigma = jnp.sqrt(jnp.sum((z - mu) ** 2, axis=-1, keepdims=True) / (d_model - 1))
        z = (z - mu) / (sigma + eps) * params["ln_gamma"] + params["ln_beta"]
    return z


# -----------------------------------------------------------------------------
# Deterministic parameter init (xavier-normal-style std), synthetic.
# -----------------------------------------------------------------------------
def init_params(key, n_head, d_model, d_k, d_v):
    k1, k2, k3, k4, k5 = jax.random.split(key, 5)

    def xavier_std(fan_in, fan_out):
        return math.sqrt(2.0 / (fan_in + fan_out))

    w_qs = jax.random.normal(k1, (n_head, d_model, d_k), jnp.float32) * xavier_std(d_model, n_head * d_k)
    w_ks = jax.random.normal(k2, (n_head, d_model, d_k), jnp.float32) * xavier_std(d_model, n_head * d_k)
    w_vs = jax.random.normal(k3, (n_head, d_model, d_v), jnp.float32) * xavier_std(d_model, n_head * d_v)
    # nn.Linear(n_head*d_v, d_model): weight is (d_model, n_head*d_v); store W^T.
    w_proj = jax.random.normal(k4, (n_head * d_v, d_model), jnp.float32) * xavier_std(n_head * d_v, d_model)
    b_proj = (jax.random.uniform(k5, (1, d_model), jnp.float32) - 0.5) * 0.1
    return {
        "w_qs": w_qs,
        "w_ks": w_ks,
        "w_vs": w_vs,
        "w_proj": w_proj,
        "b_proj": b_proj,
        "ln_gamma": jnp.ones((1, d_model), jnp.float32),
        "ln_beta": jnp.zeros((1, d_model), jnp.float32),
    }


if __name__ == "__main__":
    # Small shapes consistent with the module's forward.
    mb, seq, d_model = 2, 8, 32
    n_head, d_k, d_v = 4, 16, 16

    key = jax.random.PRNGKey(0)
    kq, kk, kv, kp = jax.random.split(key, 4)
    q = jax.random.normal(kq, (mb, seq, d_model), jnp.float32)
    k = jax.random.normal(kk, (mb, seq, d_model), jnp.float32)
    v = jax.random.normal(kv, (mb, seq, d_model), jnp.float32)

    # Key-padding style mask: batch 0 sees all 8 keys, batch 1 only the first 6.
    valid_len = jnp.array([8, 6], dtype=jnp.int32)
    key_idx = jnp.arange(seq, dtype=jnp.int32)
    attn_mask = (key_idx[None, None, :] >= valid_len[:, None, None]).astype(jnp.int32)
    attn_mask = jnp.broadcast_to(attn_mask, (mb, seq, seq))

    params = init_params(kp, n_head, d_model, d_k, d_v)

    out_ref = jax.block_until_ready(reference_mha(q, k, v, attn_mask, params))

    # f32 MXU path (exact reciprocals): tight structural check vs the reference.
    out_f32 = jax.block_until_ready(
        multi_head_attention(q, k, v, attn_mask, params, use_bf16_matmul=False))
    assert out_f32.shape == (mb, seq, d_model), out_f32.shape
    assert bool(jnp.all(jnp.isfinite(out_f32))), "non-finite output (f32 path)"
    assert bool(jnp.allclose(out_f32, out_ref, atol=3e-2, rtol=3e-2)), (
        "f32-path mismatch vs reference: max abs err = "
        f"{float(jnp.max(jnp.abs(out_f32 - out_ref)))}")

    # bf16-operand MXU path (perf path): loose check + finiteness.
    out_bf16 = jax.block_until_ready(
        multi_head_attention(q, k, v, attn_mask, params, use_bf16_matmul=True))
    assert out_bf16.shape == (mb, seq, d_model), out_bf16.shape
    assert bool(jnp.all(jnp.isfinite(out_bf16))), "non-finite output (bf16 path)"
    assert float(jnp.max(jnp.abs(out_bf16 - out_ref))) < 0.25, (
        "bf16-path deviates too much from reference")

    print("KERNEL_OK")
</pallas_src>

<mosaic_0001>
module attributes {stable_mosaic.version = 11 : i64} {
  func.func @kernel(%arg0: i32, %arg1: i32, %arg2: i32, %arg3: memref<1x8x32xf32, #tpu.memory_space<vmem>>, %arg4: memref<1x8x32xf32, #tpu.memory_space<vmem>>, %arg5: memref<1x8x32xf32, #tpu.memory_space<vmem>>, %arg6: memref<1x8x8xi8, #tpu.memory_space<vmem>>, %arg7: memref<4x32x128xf32, #tpu.memory_space<vmem>>, %arg8: memref<4x32x128xf32, #tpu.memory_space<vmem>>, %arg9: memref<4x32x128xf32, #tpu.memory_space<vmem>>, %arg10: memref<4x128x32xf32, #tpu.memory_space<vmem>>, %arg11: memref<1x32xf32, #tpu.memory_space<vmem>>, %arg12: memref<1x32xf32, #tpu.memory_space<vmem>>, %arg13: memref<1x32xf32, #tpu.memory_space<vmem>>, %arg14: memref<1x8x32xf32, #tpu.memory_space<vmem>>, %arg15: memref<4x8x128xf32, #tpu.memory_space<vmem>>, %arg16: memref<4x8x1xf32, #tpu.memory_space<vmem>>, %arg17: memref<4x8x1xf32, #tpu.memory_space<vmem>>, %arg18: memref<4x8x128xf32, #tpu.memory_space<vmem>>) attributes {dimension_semantics = [#tpu.dimension_semantics<parallel>, #tpu.dimension_semantics<parallel>, #tpu.dimension_semantics<arbitrary>], iteration_bounds = array<i64: 2, 1, 1>, scalar_prefetch = 0 : i64, scratch_operands = 4 : i64, tpu.core_type = #tpu.core_type<tc>, window_params = [{transform_indices = @transform_0, window_bounds = array<i64: 1, 8, 32>}, {transform_indices = @transform_1, window_bounds = array<i64: 1, 8, 32>}, {transform_indices = @transform_2, window_bounds = array<i64: 1, 8, 32>}, {transform_indices = @transform_3, window_bounds = array<i64: 1, 8, 8>}, {pipeline_mode = #tpu.pipeline_mode<synchronous>, transform_indices = @transform_4, window_bounds = array<i64: 4, 32, 128>}, {pipeline_mode = #tpu.pipeline_mode<synchronous>, transform_indices = @transform_5, window_bounds = array<i64: 4, 32, 128>}, {pipeline_mode = #tpu.pipeline_mode<synchronous>, transform_indices = @transform_6, window_bounds = array<i64: 4, 32, 128>}, {pipeline_mode = #tpu.pipeline_mode<synchronous>, transform_indices = @transform_7, window_bounds = array<i64: 4, 128, 32>}, {pipeline_mode = #tpu.pipeline_mode<synchronous>, transform_indices = @transform_8, window_bounds = array<i64: 1, 32>}, {pipeline_mode = #tpu.pipeline_mode<synchronous>, transform_indices = @transform_9, window_bounds = array<i64: 1, 32>}, {pipeline_mode = #tpu.pipeline_mode<synchronous>, transform_indices = @transform_10, window_bounds = array<i64: 1, 32>}, {transform_indices = @transform_11, window_bounds = array<i64: 1, 8, 32>}]} {
    %c0_i32 = arith.constant 0 : i32
    %0 = arith.cmpi eq, %arg2, %c0_i32 : i32
    %1 = arith.extui %0 : i1 to i32
    %c0_i32_0 = arith.constant 0 : i32
    %2 = arith.cmpi ne, %1, %c0_i32_0 : i32
    scf.if %2 {
      %c0_111 = arith.constant 0 : index
      %c0_112 = arith.constant 0 : index
      %c0_113 = arith.constant 0 : index
      %218 = vector.load %arg3[%c0_111, %c0_112, %c0_113] : memref<1x8x32xf32, #tpu.memory_space<vmem>>, vector<1x8x32xf32>
      %219 = vector.shape_cast %218 : vector<1x8x32xf32> to vector<8x32xf32>
      %c0_i32_114 = arith.constant 0 : i32
      %220 = arith.index_cast %c0_i32_114 : i32 to index
      %c0_115 = arith.constant 0 : index
      %c0_116 = arith.constant 0 : index
      %221 = vector.load %arg7[%220, %c0_115, %c0_116] : memref<4x32x128xf32, #tpu.memory_space<vmem>>, vector<1x32x128xf32>
      %222 = vector.shape_cast %221 : vector<1x32x128xf32> to vector<32x128xf32>
      %cst_117 = arith.constant dense<0.000000e+00> : vector<8x128xf32>
      %223 = tpu.matmul %219, %222, %cst_117 {dimension_numbers = #tpu.dot_dimension_numbers<[1], [0], [0], [1], [0, 0, 1, 1], [], []>} : vector<8x32xf32>, vector<32x128xf32>, vector<8x128xf32> -> vector<8x128xf32>
      %224 = arith.index_cast %c0_i32_114 : i32 to index
      %c0_118 = arith.constant 0 : index
      %c0_119 = arith.constant 0 : index
      %225 = vector.load %arg15[%224, %c0_118, %c0_119] : memref<4x8x128xf32, #tpu.memory_space<vmem>>, vector<1x8x128xf32>
      %226 = vector.shape_cast %225 : vector<1x8x128xf32> to vector<8x128xf32>
      %227 = vector.shape_cast %223 : vector<8x128xf32> to vector<1x8x128xf32>
      tpu.vector_store %arg15[%224, %c0_118, %c0_119], %227 {strides = array<i32>} : memref<4x8x128xf32, #tpu.memory_space<vmem>>, vector<1x8x128xf32>,
      %c1_i32_120 = arith.constant 1 : i32
      %228 = arith.index_cast %c1_i32_120 : i32 to index
      %c0_121 = arith.constant 0 : index
      %c0_122 = arith.constant 0 : index
      %229 = vector.load %arg7[%228, %c0_121, %c0_122] : memref<4x32x128xf32, #tpu.memory_space<vmem>>, vector<1x32x128xf32>
      %230 = vector.shape_cast %229 : vector<1x32x128xf32> to vector<32x128xf32>
      %cst_123 = arith.constant dense<0.000000e+00> : vector<8x128xf32>
      %231 = tpu.matmul %219, %230, %cst_123 {dimension_numbers = #tpu.dot_dimension_numbers<[1], [0], [0], [1], [0, 0, 1, 1], [], []>} : vector<8x32xf32>, vector<32x128xf32>, vector<8x128xf32> -> vector<8x128xf32>
      %232 = arith.index_cast %c1_i32_120 : i32 to index
      %c0_124 = arith.constant 0 : index
      %c0_125 = arith.constant 0 : index
      %233 = vector.load %arg15[%232, %c0_124, %c0_125] : memref<4x8x128xf32, #tpu.memory_space<vmem>>, vector<1x8x128xf32>
      %234 = vector.shape_cast %233 : vector<1x8x128xf32> to vector<8x128xf32>
      %235 = vector.shape_cast %231 : vector<8x128xf32> to vector<1x8x128xf32>
      tpu.vector_store %arg15[%232, %c0_124, %c0_125], %235 {strides = array<i32>} : memref<4x8x128xf32, #tpu.memory_space<vmem>>, vector<1x8x128xf32>,
      %c2_i32_126 = arith.constant 2 : i32
      %236 = arith.index_cast %c2_i32_126 : i32 to index
      %c0_127 = arith.constant 0 : index
      %c0_128 = arith.constant 0 : index
      %237 = vector.load %arg7[%236, %c0_127, %c0_128] : memref<4x32x128xf32, #tpu.memory_space<vmem>>, vector<1x32x128xf32>
      %238 = vector.shape_cast %237 : vector<1x32x128xf32> to vector<32x128xf32>
      %cst_129 = arith.constant dense<0.000000e+00> : vector<8x128xf32>
      %239 = tpu.matmul %219, %238, %cst_129 {dimension_numbers = #tpu.dot_dimension_numbers<[1], [0], [0], [1], [0, 0, 1, 1], [], []>} : vector<8x32xf32>, vector<32x128xf32>, vector<8x128xf32> -> vector<8x128xf32>
      %240 = arith.index_cast %c2_i32_126 : i32 to index
      %c0_130 = arith.constant 0 : index
      %c0_131 = arith.constant 0 : index
      %241 = vector.load %arg15[%240, %c0_130, %c0_131] : memref<4x8x128xf32, #tpu.memory_space<vmem>>, vector<1x8x128xf32>
      %242 = vector.shape_cast %241 : vector<1x8x128xf32> to vector<8x128xf32>
      %243 = vector.shape_cast %239 : vector<8x128xf32> to vector<1x8x128xf32>
      tpu.vector_store %arg15[%240, %c0_130, %c0_131], %243 {strides = array<i32>} : memref<4x8x128xf32, #tpu.memory_space<vmem>>, vector<1x8x128xf32>,
      %c3_i32_132 = arith.constant 3 : i32
      %244 = arith.index_cast %c3_i32_132 : i32 to index
      %c0_133 = arith.constant 0 : index
      %c0_134 = arith.constant 0 : index
      %245 = vector.load %arg7[%244, %c0_133, %c0_134] : memref<4x32x128xf32, #tpu.memory_space<vmem>>, vector<1x32x128xf32>
      %246 = vector.shape_cast %245 : vector<1x32x128xf32> to vector<32x128xf32>
      %cst_135 = arith.constant dense<0.000000e+00> : vector<8x128xf32>
      %247 = tpu.matmul %219, %246, %cst_135 {dimension_numbers = #tpu.dot_dimension_numbers<[1], [0], [0], [1], [0, 0, 1, 1], [], []>} : vector<8x32xf32>, vector<32x128xf32>, vector<8x128xf32> -> vector<8x128xf32>
      %248 = arith.index_cast %c3_i32_132 : i32 to index
      %c0_136 = arith.constant 0 : index
      %c0_137 = arith.constant 0 : index
      %249 = vector.load %arg15[%248, %c0_136, %c0_137] : memref<4x8x128xf32, #tpu.memory_space<vmem>>, vector<1x8x128xf32>
      %250 = vector.shape_cast %249 : vector<1x8x128xf32> to vector<8x128xf32>
      %251 = vector.shape_cast %247 : vector<8x128xf32> to vector<1x8x128xf32>
      tpu.vector_store %arg15[%248, %c0_136, %c0_137], %251 {strides = array<i32>} : memref<4x8x128xf32, #tpu.memory_space<vmem>>, vector<1x8x128xf32>,
      %c4_i32_138 = arith.constant 4 : i32
      %cst_139 = arith.constant 0xFF800000 : f32
      %252 = vector.broadcast %cst_139 : f32 to vector<4x8x1xf32>
      %c0_140 = arith.constant 0 : index
      %c0_141 = arith.constant 0 : index
      %c0_142 = arith.constant 0 : index
      %253 = vector.load %arg16[%c0_140, %c0_141, %c0_142] : memref<4x8x1xf32, #tpu.memory_space<vmem>>, vector<4x8x1xf32>
      tpu.vector_store %arg16[%c0_140, %c0_141, %c0_142], %252 {strides = array<i32>} : memref<4x8x1xf32, #tpu.memory_space<vmem>>, vector<4x8x1xf32>,
      %cst_143 = arith.constant 0.000000e+00 : f32
      %254 = vector.broadcast %cst_143 : f32 to vector<4x8x1xf32>
      %c0_144 = arith.constant 0 : index
      %c0_145 = arith.constant 0 : index
      %c0_146 = arith.constant 0 : index
      %255 = vector.load %arg17[%c0_144, %c0_145, %c0_146] : memref<4x8x1xf32, #tpu.memory_space<vmem>>, vector<4x8x1xf32>
      tpu.vector_store %arg17[%c0_144, %c0_145, %c0_146], %254 {strides = array<i32>} : memref<4x8x1xf32, #tpu.memory_space<vmem>>, vector<4x8x1xf32>,
      %cst_147 = arith.constant 0.000000e+00 : f32
      %256 = vector.broadcast %cst_147 : f32 to vector<4x8x128xf32>
      %c0_148 = arith.constant 0 : index
      %c0_149 = arith.constant 0 : index
      %c0_150 = arith.constant 0 : index
      %257 = vector.load %arg18[%c0_148, %c0_149, %c0_150] : memref<4x8x128xf32, #tpu.memory_space<vmem>>, vector<4x8x128xf32>
      tpu.vector_store %arg18[%c0_148, %c0_149, %c0_150], %256 {strides = array<i32>} : memref<4x8x128xf32, #tpu.memory_space<vmem>>, vector<4x8x128xf32>,
    } else {
    }
    %c0 = arith.constant 0 : index
    %c0_1 = arith.constant 0 : index
    %c0_2 = arith.constant 0 : index
    %3 = vector.load %arg6[%c0, %c0_1, %c0_2] : memref<1x8x8xi8, #tpu.memory_space<vmem>>, vector<1x8x8xi8>
    %4 = vector.shape_cast %3 : vector<1x8x8xi8> to vector<8x8xi8>
    %c0_i8 = arith.constant 0 : i8
    %5 = vector.broadcast %c0_i8 : i8 to vector<8x8xi8>
    %6 = arith.cmpi ne, %4, %5 : vector<8x8xi8>
    %c0_3 = arith.constant 0 : index
    %c0_4 = arith.constant 0 : index
    %c0_5 = arith.constant 0 : index
    %7 = vector.load %arg4[%c0_3, %c0_4, %c0_5] : memref<1x8x32xf32, #tpu.memory_space<vmem>>, vector<1x8x32xf32>
    %8 = vector.shape_cast %7 : vector<1x8x32xf32> to vector<8x32xf32>
    %c0_6 = arith.constant 0 : index
    %c0_7 = arith.constant 0 : index
    %c0_8 = arith.constant 0 : index
    %9 = vector.load %arg5[%c0_6, %c0_7, %c0_8] : memref<1x8x32xf32, #tpu.memory_space<vmem>>, vector<1x8x32xf32>
    %10 = vector.shape_cast %9 : vector<1x8x32xf32> to vector<8x32xf32>
    %c0_i32_9 = arith.constant 0 : i32
    %11 = arith.index_cast %c0_i32_9 : i32 to index
    %c0_10 = arith.constant 0 : index
    %c0_11 = arith.constant 0 : index
    %12 = vector.load %arg8[%11, %c0_10, %c0_11] : memref<4x32x128xf32, #tpu.memory_space<vmem>>, vector<1x32x128xf32>
    %13 = vector.shape_cast %12 : vector<1x32x128xf32> to vector<32x128xf32>
    %cst = arith.constant dense<0.000000e+00> : vector<8x128xf32>
    %14 = tpu.matmul %8, %13, %cst {dimension_numbers = #tpu.dot_dimension_numbers<[1], [0], [0], [1], [0, 0, 1, 1], [], []>} : vector<8x32xf32>, vector<32x128xf32>, vector<8x128xf32> -> vector<8x128xf32>
    %15 = arith.index_cast %c0_i32_9 : i32 to index
    %c0_12 = arith.constant 0 : index
    %c0_13 = arith.constant 0 : index
    %16 = vector.load %arg9[%15, %c0_12, %c0_13] : memref<4x32x128xf32, #tpu.memory_space<vmem>>, vector<1x32x128xf32>
    %17 = vector.shape_cast %16 : vector<1x32x128xf32> to vector<32x128xf32>
    %cst_14 = arith.constant dense<0.000000e+00> : vector<8x128xf32>
    %18 = tpu.matmul %10, %17, %cst_14 {dimension_numbers = #tpu.dot_dimension_numbers<[1], [0], [0], [1], [0, 0, 1, 1], [], []>} : vector<8x32xf32>, vector<32x128xf32>, vector<8x128xf32> -> vector<8x128xf32>
    %19 = arith.index_cast %c0_i32_9 : i32 to index
    %c0_15 = arith.constant 0 : index
    %c0_16 = arith.constant 0 : index
    %20 = vector.load %arg15[%19, %c0_15, %c0_16] : memref<4x8x128xf32, #tpu.memory_space<vmem>>, vector<1x8x128xf32>
    %21 = vector.shape_cast %20 : vector<1x8x128xf32> to vector<8x128xf32>
    %cst_17 = arith.constant dense<0.000000e+00> : vector<8x8xf32>
    %22 = tpu.matmul %21, %14, %cst_17 {dimension_numbers = #tpu.dot_dimension_numbers<[1], [1], [0], [0], [0, 0, 1, 0], [], []>} : vector<8x128xf32>, vector<8x128xf32>, vector<8x8xf32> -> vector<8x8xf32>
    %cst_18 = arith.constant -1.000000e+30 : f32
    %23 = vector.broadcast %cst_18 : f32 to vector<8x8xf32>
    %24 = arith.select %6, %23, %22 : vector<8x8xi1>, vector<8x8xf32>
    %25 = arith.index_cast %c0_i32_9 : i32 to index
    %c0_19 = arith.constant 0 : index
    %c0_20 = arith.constant 0 : index
    %26 = vector.load %arg16[%25, %c0_19, %c0_20] : memref<4x8x1xf32, #tpu.memory_space<vmem>>, vector<1x8x1xf32>
    %27 = vector.shape_cast %26 : vector<1x8x1xf32> to vector<8x1xf32>
    %28 = arith.index_cast %c0_i32_9 : i32 to index
    %c0_21 = arith.constant 0 : index
    %c0_22 = arith.constant 0 : index
    %29 = vector.load %arg17[%28, %c0_21, %c0_22] : memref<4x8x1xf32, #tpu.memory_space<vmem>>, vector<1x8x1xf32>
    %30 = vector.shape_cast %29 : vector<1x8x1xf32> to vector<8x1xf32>
    %31 = arith.index_cast %c0_i32_9 : i32 to index
    %c0_23 = arith.constant 0 : index
    %c0_24 = arith.constant 0 : index
    %32 = vector.load %arg18[%31, %c0_23, %c0_24] : memref<4x8x128xf32, #tpu.memory_space<vmem>>, vector<1x8x128xf32>
    %33 = vector.shape_cast %32 : vector<1x8x128xf32> to vector<8x128xf32>
    %cst_25 = arith.constant dense<0xFF800000> : vector<8xf32>
    %34 = vector.multi_reduction <maximumf>, %24, %cst_25 [1] : vector<8x8xf32> to vector<8xf32>
    %35 = vector.shape_cast %34 : vector<8xf32> to vector<8x1xf32>
    %36 = arith.maximumf %27, %35 : vector<8x1xf32>
    %37 = arith.subf %27, %36 : vector<8x1xf32>
    %38 = math.exp %37 : vector<8x1xf32>
    %39 = vector.broadcast %36 : vector<8x1xf32> to vector<8x8xf32>
    %40 = arith.subf %24, %39 : vector<8x8xf32>
    %41 = math.exp %40 : vector<8x8xf32>
    %42 = arith.index_cast %c0_i32_9 : i32 to index
    %c0_26 = arith.constant 0 : index
    %c0_27 = arith.constant 0 : index
    %43 = vector.load %arg16[%42, %c0_26, %c0_27] : memref<4x8x1xf32, #tpu.memory_space<vmem>>, vector<1x8x1xf32>
    %44 = vector.shape_cast %43 : vector<1x8x1xf32> to vector<8x1xf32>
    %45 = vector.shape_cast %36 : vector<8x1xf32> to vector<1x8x1xf32>
    tpu.vector_store %arg16[%42, %c0_26, %c0_27], %45 {strides = array<i32>} : memref<4x8x1xf32, #tpu.memory_space<vmem>>, vector<1x8x1xf32>,
    %46 = arith.mulf %38, %30 : vector<8x1xf32>
    %cst_28 = arith.constant dense<0.000000e+00> : vector<8xf32>
    %47 = vector.multi_reduction <add>, %41, %cst_28 [1] : vector<8x8xf32> to vector<8xf32>
    %48 = vector.shape_cast %47 : vector<8xf32> to vector<8x1xf32>
    %49 = arith.addf %46, %48 : vector<8x1xf32>
    %50 = arith.index_cast %c0_i32_9 : i32 to index
    %c0_29 = arith.constant 0 : index
    %c0_30 = arith.constant 0 : index
    %51 = vector.load %arg17[%50, %c0_29, %c0_30] : memref<4x8x1xf32, #tpu.memory_space<vmem>>, vector<1x8x1xf32>
    %52 = vector.shape_cast %51 : vector<1x8x1xf32> to vector<8x1xf32>
    %53 = vector.shape_cast %49 : vector<8x1xf32> to vector<1x8x1xf32>
    tpu.vector_store %arg17[%50, %c0_29, %c0_30], %53 {strides = array<i32>} : memref<4x8x1xf32, #tpu.memory_space<vmem>>, vector<1x8x1xf32>,
    %54 = vector.broadcast %38 : vector<8x1xf32> to vector<8x128xf32>
    %55 = arith.mulf %54, %33 : vector<8x128xf32>
    %cst_31 = arith.constant dense<0.000000e+00> : vector<8x128xf32>
    %56 = tpu.matmul %41, %18, %cst_31 {dimension_numbers = #tpu.dot_dimension_numbers<[1], [0], [0], [1], [0, 0, 1, 1], [], []>} : vector<8x8xf32>, vector<8x128xf32>, vector<8x128xf32> -> vector<8x128xf32>
    %57 = arith.addf %55, %56 : vector<8x128xf32>
    %58 = arith.index_cast %c0_i32_9 : i32 to index
    %c0_32 = arith.constant 0 : index
    %c0_33 = arith.constant 0 : index
    %59 = vector.load %arg18[%58, %c0_32, %c0_33] : memref<4x8x128xf32, #tpu.memory_space<vmem>>, vector<1x8x128xf32>
    %60 = vector.shape_cast %59 : vector<1x8x128xf32> to vector<8x128xf32>
    %61 = vector.shape_cast %57 : vector<8x128xf32> to vector<1x8x128xf32>
    tpu.vector_store %arg18[%58, %c0_32, %c0_33], %61 {strides = array<i32>} : memref<4x8x128xf32, #tpu.memory_space<vmem>>, vector<1x8x128xf32>,
    %c1_i32 = arith.constant 1 : i32
    %62 = arith.index_cast %c1_i32 : i32 to index
    %c0_34 = arith.constant 0 : index
    %c0_35 = arith.constant 0 : index
    %63 = vector.load %arg8[%62, %c0_34, %c0_35] : memref<4x32x128xf32, #tpu.memory_space<vmem>>, vector<1x32x128xf32>
    %64 = vector.shape_cast %63 : vector<1x32x128xf32> to vector<32x128xf32>
    %cst_36 = arith.constant dense<0.000000e+00> : vector<8x128xf32>
    %65 = tpu.matmul %8, %64, %cst_36 {dimension_numbers = #tpu.dot_dimension_numbers<[1], [0], [0], [1], [0, 0, 1, 1], [], []>} : vector<8x32xf32>, vector<32x128xf32>, vector<8x128xf32> -> vector<8x128xf32>
    %66 = arith.index_cast %c1_i32 : i32 to index
    %c0_37 = arith.constant 0 : index
    %c0_38 = arith.constant 0 : index
    %67 = vector.load %arg9[%66, %c0_37, %c0_38] : memref<4x32x128xf32, #tpu.memory_space<vmem>>, vector<1x32x128xf32>
    %68 = vector.shape_cast %67 : vector<1x32x128xf32> to vector<32x128xf32>
    %cst_39 = arith.constant dense<0.000000e+00> : vector<8x128xf32>
    %69 = tpu.matmul %10, %68, %cst_39 {dimension_numbers = #tpu.dot_dimension_numbers<[1], [0], [0], [1], [0, 0, 1, 1], [], []>} : vector<8x32xf32>, vector<32x128xf32>, vector<8x128xf32> -> vector<8x128xf32>
    %70 = arith.index_cast %c1_i32 : i32 to index
    %c0_40 = arith.constant 0 : index
    %c0_41 = arith.constant 0 : index
    %71 = vector.load %arg15[%70, %c0_40, %c0_41] : memref<4x8x128xf32, #tpu.memory_space<vmem>>, vector<1x8x128xf32>
    %72 = vector.shape_cast %71 : vector<1x8x128xf32> to vector<8x128xf32>
    %cst_42 = arith.constant dense<0.000000e+00> : vector<8x8xf32>
    %73 = tpu.matmul %72, %65, %cst_42 {dimension_numbers = #tpu.dot_dimension_numbers<[1], [1], [0], [0], [0, 0, 1, 0], [], []>} : vector<8x128xf32>, vector<8x128xf32>, vector<8x8xf32> -> vector<8x8xf32>
    %cst_43 = arith.constant -1.000000e+30 : f32
    %74 = vector.broadcast %cst_43 : f32 to vector<8x8xf32>
    %75 = arith.select %6, %74, %73 : vector<8x8xi1>, vector<8x8xf32>
    %76 = arith.index_cast %c1_i32 : i32 to index
    %c0_44 = arith.constant 0 : index
    %c0_45 = arith.constant 0 : index
    %77 = vector.load %arg16[%76, %c0_44, %c0_45] : memref<4x8x1xf32, #tpu.memory_space<vmem>>, vector<1x8x1xf32>
    %78 = vector.shape_cast %77 : vector<1x8x1xf32> to vector<8x1xf32>
    %79 = arith.index_cast %c1_i32 : i32 to index
    %c0_46 = arith.constant 0 : index
    %c0_47 = arith.constant 0 : index
    %80 = vector.load %arg17[%79, %c0_46, %c0_47] : memref<4x8x1xf32, #tpu.memory_space<vmem>>, vector<1x8x1xf32>
    %81 = vector.shape_cast %80 : vector<1x8x1xf32> to vector<8x1xf32>
    %82 = arith.index_cast %c1_i32 : i32 to index
    %c0_48 = arith.constant 0 : index
    %c0_49 = arith.constant 0 : index
    %83 = vector.load %arg18[%82, %c0_48, %c0_49] : memref<4x8x128xf32, #tpu.memory_space<vmem>>, vector<1x8x128xf32>
    %84 = vector.shape_cast %83 : vector<1x8x128xf32> to vector<8x128xf32>
    %cst_50 = arith.constant dense<0xFF800000> : vector<8xf32>
    %85 = vector.multi_reduction <maximumf>, %75, %cst_50 [1] : vector<8x8xf32> to vector<8xf32>
    %86 = vector.shape_cast %85 : vector<8xf32> to vector<8x1xf32>
    %87 = arith.maximumf %78, %86 : vector<8x1xf32>
    %88 = arith.subf %78, %87 : vector<8x1xf32>
    %89 = math.exp %88 : vector<8x1xf32>
    %90 = vector.broadcast %87 : vector<8x1xf32> to vector<8x8xf32>
    %91 = arith.subf %75, %90 : vector<8x8xf32>
    %92 = math.exp %91 : vector<8x8xf32>
    %93 = arith.index_cast %c1_i32 : i32 to index
    %c0_51 = arith.constant 0 : index
    %c0_52 = arith.constant 0 : index
    %94 = vector.load %arg16[%93, %c0_51, %c0_52] : memref<4x8x1xf32, #tpu.memory_space<vmem>>, vector<1x8x1xf32>
    %95 = vector.shape_cast %94 : vector<1x8x1xf32> to vector<8x1xf32>
    %96 = vector.shape_cast %87 : vector<8x1xf32> to vector<1x8x1xf32>
    tpu.vector_store %arg16[%93, %c0_51, %c0_52], %96 {strides = array<i32>} : memref<4x8x1xf32, #tpu.memory_space<vmem>>, vector<1x8x1xf32>,
    %97 = arith.mulf %89, %81 : vector<8x1xf32>
    %cst_53 = arith.constant dense<0.000000e+00> : vector<8xf32>
    %98 = vector.multi_reduction <add>, %92, %cst_53 [1] : vector<8x8xf32> to vector<8xf32>
    %99 = vector.shape_cast %98 : vector<8xf32> to vector<8x1xf32>
    %100 = arith.addf %97, %99 : vector<8x1xf32>
    %101 = arith.index_cast %c1_i32 : i32 to index
    %c0_54 = arith.constant 0 : index
    %c0_55 = arith.constant 0 : index
    %102 = vector.load %arg17[%101, %c0_54, %c0_55] : memref<4x8x1xf32, #tpu.memory_space<vmem>>, vector<1x8x1xf32>
    %103 = vector.shape_cast %102 : vector<1x8x1xf32> to vector<8x1xf32>
    %104 = vector.shape_cast %100 : vector<8x1xf32> to vector<1x8x1xf32>
    tpu.vector_store %arg17[%101, %c0_54, %c0_55], %104 {strides = array<i32>} : memref<4x8x1xf32, #tpu.memory_space<vmem>>, vector<1x8x1xf32>,
    %105 = vector.broadcast %89 : vector<8x1xf32> to vector<8x128xf32>
    %106 = arith.mulf %105, %84 : vector<8x128xf32>
    %cst_56 = arith.constant dense<0.000000e+00> : vector<8x128xf32>
    %107 = tpu.matmul %92, %69, %cst_56 {dimension_numbers = #tpu.dot_dimension_numbers<[1], [0], [0], [1], [0, 0, 1, 1], [], []>} : vector<8x8xf32>, vector<8x128xf32>, vector<8x128xf32> -> vector<8x128xf32>
    %108 = arith.addf %106, %107 : vector<8x128xf32>
    %109 = arith.index_cast %c1_i32 : i32 to index
    %c0_57 = arith.constant 0 : index
    %c0_58 = arith.constant 0 : index
    %110 = vector.load %arg18[%109, %c0_57, %c0_58] : memref<4x8x128xf32, #tpu.memory_space<vmem>>, vector<1x8x128xf32>
    %111 = vector.shape_cast %110 : vector<1x8x128xf32> to vector<8x128xf32>
    %112 = vector.shape_cast %108 : vector<8x128xf32> to vector<1x8x128xf32>
    tpu.vector_store %arg18[%109, %c0_57, %c0_58], %112 {strides = array<i32>} : memref<4x8x128xf32, #tpu.memory_space<vmem>>, vector<1x8x128xf32>,
    %c2_i32 = arith.constant 2 : i32
    %113 = arith.index_cast %c2_i32 : i32 to index
    %c0_59 = arith.constant 0 : index
    %c0_60 = arith.constant 0 : index
    %114 = vector.load %arg8[%113, %c0_59, %c0_60] : memref<4x32x128xf32, #tpu.memory_space<vmem>>, vector<1x32x128xf32>
    %115 = vector.shape_cast %114 : vector<1x32x128xf32> to vector<32x128xf32>
    %cst_61 = arith.constant dense<0.000000e+00> : vector<8x128xf32>
    %116 = tpu.matmul %8, %115, %cst_61 {dimension_numbers = #tpu.dot_dimension_numbers<[1], [0], [0], [1], [0, 0, 1, 1], [], []>} : vector<8x32xf32>, vector<32x128xf32>, vector<8x128xf32> -> vector<8x128xf32>
    %117 = arith.index_cast %c2_i32 : i32 to index
    %c0_62 = arith.constant 0 : index
    %c0_63 = arith.constant 0 : index
    %118 = vector.load %arg9[%117, %c0_62, %c0_63] : memref<4x32x128xf32, #tpu.memory_space<vmem>>, vector<1x32x128xf32>
    %119 = vector.shape_cast %118 : vector<1x32x128xf32> to vector<32x128xf32>
    %cst_64 = arith.constant dense<0.000000e+00> : vector<8x128xf32>
    %120 = tpu.matmul %10, %119, %cst_64 {dimension_numbers = #tpu.dot_dimension_numbers<[1], [0], [0], [1], [0, 0, 1, 1], [], []>} : vector<8x32xf32>, vector<32x128xf32>, vector<8x128xf32> -> vector<8x128xf32>
    %121 = arith.index_cast %c2_i32 : i32 to index
    %c0_65 = arith.constant 0 : index
    %c0_66 = arith.constant 0 : index
    %122 = vector.load %arg15[%121, %c0_65, %c0_66] : memref<4x8x128xf32, #tpu.memory_space<vmem>>, vector<1x8x128xf32>
    %123 = vector.shape_cast %122 : vector<1x8x128xf32> to vector<8x128xf32>
    %cst_67 = arith.constant dense<0.000000e+00> : vector<8x8xf32>
    %124 = tpu.matmul %123, %116, %cst_67 {dimension_numbers = #tpu.dot_dimension_numbers<[1], [1], [0], [0], [0, 0, 1, 0], [], []>} : vector<8x128xf32>, vector<8x128xf32>, vector<8x8xf32> -> vector<8x8xf32>
    %cst_68 = arith.constant -1.000000e+30 : f32
    %125 = vector.broadcast %cst_68 : f32 to vector<8x8xf32>
    %126 = arith.select %6, %125, %124 : vector<8x8xi1>, vector<8x8xf32>
    %127 = arith.index_cast %c2_i32 : i32 to index
    %c0_69 = arith.constant 0 : index
    %c0_70 = arith.constant 0 : index
    %128 = vector.load %arg16[%127, %c0_69, %c0_70] : memref<4x8x1xf32, #tpu.memory_space<vmem>>, vector<1x8x1xf32>
    %129 = vector.shape_cast %128 : vector<1x8x1xf32> to vector<8x1xf32>
    %130 = arith.index_cast %c2_i32 : i32 to index
    %c0_71 = arith.constant 0 : index
    %c0_72 = arith.constant 0 : index
    %131 = vector.load %arg17[%130, %c0_71, %c0_72] : memref<4x8x1xf32, #tpu.memory_space<vmem>>, vector<1x8x1xf32>
    %132 = vector.shape_cast %131 : vector<1x8x1xf32> to vector<8x1xf32>
    %133 = arith.index_cast %c2_i32 : i32 to index
    %c0_73 = arith.constant 0 : index
    %c0_74 = arith.constant 0 : index
    %134 = vector.load %arg18[%133, %c0_73, %c0_74] : memref<4x8x128xf32, #tpu.memory_space<vmem>>, vector<1x8x128xf32>
    %135 = vector.shape_cast %134 : vector<1x8x128xf32> to vector<8x128xf32>
    %cst_75 = arith.constant dense<0xFF800000> : vector<8xf32>
    %136 = vector.multi_reduction <maximumf>, %126, %cst_75 [1] : vector<8x8xf32> to vector<8xf32>
    %137 = vector.shape_cast %136 : vector<8xf32> to vector<8x1xf32>
    %138 = arith.maximumf %129, %137 : vector<8x1xf32>
    %139 = arith.subf %129, %138 : vector<8x1xf32>
    %140 = math.exp %139 : vector<8x1xf32>
    %141 = vector.broadcast %138 : vector<8x1xf32> to vector<8x8xf32>
    %142 = arith.subf %126, %141 : vector<8x8xf32>
    %143 = math.exp %142 : vector<8x8xf32>
    %144 = arith.index_cast %c2_i32 : i32 to index
    %c0_76 = arith.constant 0 : index
    %c0_77 = arith.constant 0 : index
    %145 = vector.load %arg16[%144, %c0_76, %c0_77] : memref<4x8x1xf32, #tpu.memory_space<vmem>>, vector<1x8x1xf32>
    %146 = vector.shape_cast %145 : vector<1x8x1xf32> to vector<8x1xf32>
    %147 = vector.shape_cast %138 : vector<8x1xf32> to vector<1x8x1xf32>
    tpu.vector_store %arg16[%144, %c0_76, %c0_77], %147 {strides = array<i32>} : memref<4x8x1xf32, #tpu.memory_space<vmem>>, vector<1x8x1xf32>,
    %148 = arith.mulf %140, %132 : vector<8x1xf32>
    %cst_78 = arith.constant dense<0.000000e+00> : vector<8xf32>
    %149 = vector.multi_reduction <add>, %143, %cst_78 [1] : vector<8x8xf32> to vector<8xf32>
    %150 = vector.shape_cast %149 : vector<8xf32> to vector<8x1xf32>
    %151 = arith.addf %148, %150 : vector<8x1xf32>
    %152 = arith.index_cast %c2_i32 : i32 to index
    %c0_79 = arith.constant 0 : index
    %c0_80 = arith.constant 0 : index
    %153 = vector.load %arg17[%152, %c0_79, %c0_80] : memref<4x8x1xf32, #tpu.memory_space<vmem>>, vector<1x8x1xf32>
    %154 = vector.shape_cast %153 : vector<1x8x1xf32> to vector<8x1xf32>
    %155 = vector.shape_cast %151 : vector<8x1xf32> to vector<1x8x1xf32>
    tpu.vector_store %arg17[%152, %c0_79, %c0_80], %155 {strides = array<i32>} : memref<4x8x1xf32, #tpu.memory_space<vmem>>, vector<1x8x1xf32>,
    %156 = vector.broadcast %140 : vector<8x1xf32> to vector<8x128xf32>
    %157 = arith.mulf %156, %135 : vector<8x128xf32>
    %cst_81 = arith.constant dense<0.000000e+00> : vector<8x128xf32>
    %158 = tpu.matmul %143, %120, %cst_81 {dimension_numbers = #tpu.dot_dimension_numbers<[1], [0], [0], [1], [0, 0, 1, 1], [], []>} : vector<8x8xf32>, vector<8x128xf32>, vector<8x128xf32> -> vector<8x128xf32>
    %159 = arith.addf %157, %158 : vector<8x128xf32>
    %160 = arith.index_cast %c2_i32 : i32 to index
    %c0_82 = arith.constant 0 : index
    %c0_83 = arith.constant 0 : index
    %161 = vector.load %arg18[%160, %c0_82, %c0_83] : memref<4x8x128xf32, #tpu.memory_space<vmem>>, vector<1x8x128xf32>
    %162 = vector.shape_cast %161 : vector<1x8x128xf32> to vector<8x128xf32>
    %163 = vector.shape_cast %159 : vector<8x128xf32> to vector<1x8x128xf32>
    tpu.vector_store %arg18[%160, %c0_82, %c0_83], %163 {strides = array<i32>} : memref<4x8x128xf32, #tpu.memory_space<vmem>>, vector<1x8x128xf32>,
    %c3_i32 = arith.constant 3 : i32
    %164 = arith.index_cast %c3_i32 : i32 to index
    %c0_84 = arith.constant 0 : index
    %c0_85 = arith.constant 0 : index
    %165 = vector.load %arg8[%164, %c0_84, %c0_85] : memref<4x32x128xf32, #tpu.memory_space<vmem>>, vector<1x32x128xf32>
    %166 = vector.shape_cast %165 : vector<1x32x128xf32> to vector<32x128xf32>
    %cst_86 = arith.constant dense<0.000000e+00> : vector<8x128xf32>
    %167 = tpu.matmul %8, %166, %cst_86 {dimension_numbers = #tpu.dot_dimension_numbers<[1], [0], [0], [1], [0, 0, 1, 1], [], []>} : vector<8x32xf32>, vector<32x128xf32>, vector<8x128xf32> -> vector<8x128xf32>
    %168 = arith.index_cast %c3_i32 : i32 to index
    %c0_87 = arith.constant 0 : index
    %c0_88 = arith.constant 0 : index
    %169 = vector.load %arg9[%168, %c0_87, %c0_88] : memref<4x32x128xf32, #tpu.memory_space<vmem>>, vector<1x32x128xf32>
    %170 = vector.shape_cast %169 : vector<1x32x128xf32> to vector<32x128xf32>
    %cst_89 = arith.constant dense<0.000000e+00> : vector<8x128xf32>
    %171 = tpu.matmul %10, %170, %cst_89 {dimension_numbers = #tpu.dot_dimension_numbers<[1], [0], [0], [1], [0, 0, 1, 1], [], []>} : vector<8x32xf32>, vector<32x128xf32>, vector<8x128xf32> -> vector<8x128xf32>
    %172 = arith.index_cast %c3_i32 : i32 to index
    %c0_90 = arith.constant 0 : index
    %c0_91 = arith.constant 0 : index
    %173 = vector.load %arg15[%172, %c0_90, %c0_91] : memref<4x8x128xf32, #tpu.memory_space<vmem>>, vector<1x8x128xf32>
    %174 = vector.shape_cast %173 : vector<1x8x128xf32> to vector<8x128xf32>
    %cst_92 = arith.constant dense<0.000000e+00> : vector<8x8xf32>
    %175 = tpu.matmul %174, %167, %cst_92 {dimension_numbers = #tpu.dot_dimension_numbers<[1], [1], [0], [0], [0, 0, 1, 0], [], []>} : vector<8x128xf32>, vector<8x128xf32>, vector<8x8xf32> -> vector<8x8xf32>
    %cst_93 = arith.constant -1.000000e+30 : f32
    %176 = vector.broadcast %cst_93 : f32 to vector<8x8xf32>
    %177 = arith.select %6, %176, %175 : vector<8x8xi1>, vector<8x8xf32>
    %178 = arith.index_cast %c3_i32 : i32 to index
    %c0_94 = arith.constant 0 : index
    %c0_95 = arith.constant 0 : index
    %179 = vector.load %arg16[%178, %c0_94, %c0_95] : memref<4x8x1xf32, #tpu.memory_space<vmem>>, vector<1x8x1xf32>
    %180 = vector.shape_cast %179 : vector<1x8x1xf32> to vector<8x1xf32>
    %181 = arith.index_cast %c3_i32 : i32 to index
    %c0_96 = arith.constant 0 : index
    %c0_97 = arith.constant 0 : index
    %182 = vector.load %arg17[%181, %c0_96, %c0_97] : memref<4x8x1xf32, #tpu.memory_space<vmem>>, vector<1x8x1xf32>
    %183 = vector.shape_cast %182 : vector<1x8x1xf32> to vector<8x1xf32>
    %184 = arith.index_cast %c3_i32 : i32 to index
    %c0_98 = arith.constant 0 : index
    %c0_99 = arith.constant 0 : index
    %185 = vector.load %arg18[%184, %c0_98, %c0_99] : memref<4x8x128xf32, #tpu.memory_space<vmem>>, vector<1x8x128xf32>
    %186 = vector.shape_cast %185 : vector<1x8x128xf32> to vector<8x128xf32>
    %cst_100 = arith.constant dense<0xFF800000> : vector<8xf32>
    %187 = vector.multi_reduction <maximumf>, %177, %cst_100 [1] : vector<8x8xf32> to vector<8xf32>
    %188 = vector.shape_cast %187 : vector<8xf32> to vector<8x1xf32>
    %189 = arith.maximumf %180, %188 : vector<8x1xf32>
    %190 = arith.subf %180, %189 : vector<8x1xf32>
    %191 = math.exp %190 : vector<8x1xf32>
    %192 = vector.broadcast %189 : vector<8x1xf32> to vector<8x8xf32>
    %193 = arith.subf %177, %192 : vector<8x8xf32>
    %194 = math.exp %193 : vector<8x8xf32>
    %195 = arith.index_cast %c3_i32 : i32 to index
    %c0_101 = arith.constant 0 : index
    %c0_102 = arith.constant 0 : index
    %196 = vector.load %arg16[%195, %c0_101, %c0_102] : memref<4x8x1xf32, #tpu.memory_space<vmem>>, vector<1x8x1xf32>
    %197 = vector.shape_cast %196 : vector<1x8x1xf32> to vector<8x1xf32>
    %198 = vector.shape_cast %189 : vector<8x1xf32> to vector<1x8x1xf32>
    tpu.vector_store %arg16[%195, %c0_101, %c0_102], %198 {strides = array<i32>} : memref<4x8x1xf32, #tpu.memory_space<vmem>>, vector<1x8x1xf32>,
    %199 = arith.mulf %191, %183 : vector<8x1xf32>
    %cst_103 = arith.constant dense<0.000000e+00> : vector<8xf32>
    %200 = vector.multi_reduction <add>, %194, %cst_103 [1] : vector<8x8xf32> to vector<8xf32>
    %201 = vector.shape_cast %200 : vector<8xf32> to vector<8x1xf32>
    %202 = arith.addf %199, %201 : vector<8x1xf32>
    %203 = arith.index_cast %c3_i32 : i32 to index
    %c0_104 = arith.constant 0 : index
    %c0_105 = arith.constant 0 : index
    %204 = vector.load %arg17[%203, %c0_104, %c0_105] : memref<4x8x1xf32, #tpu.memory_space<vmem>>, vector<1x8x1xf32>
    %205 = vector.shape_cast %204 : vector<1x8x1xf32> to vector<8x1xf32>
    %206 = vector.shape_cast %202 : vector<8x1xf32> to vector<1x8x1xf32>
    tpu.vector_store %arg17[%203, %c0_104, %c0_105], %206 {strides = array<i32>} : memref<4x8x1xf32, #tpu.memory_space<vmem>>, vector<1x8x1xf32>,
    %207 = vector.broadcast %191 : vector<8x1xf32> to vector<8x128xf32>
    %208 = arith.mulf %207, %186 : vector<8x128xf32>
    %cst_106 = arith.constant dense<0.000000e+00> : vector<8x128xf32>
    %209 = tpu.matmul %194, %171, %cst_106 {dimension_numbers = #tpu.dot_dimension_numbers<[1], [0], [0], [1], [0, 0, 1, 1], [], []>} : vector<8x8xf32>, vector<8x128xf32>, vector<8x128xf32> -> vector<8x128xf32>
    %210 = arith.addf %208, %209 : vector<8x128xf32>
    %211 = arith.index_cast %c3_i32 : i32 to index
    %c0_107 = arith.constant 0 : index
    %c0_108 = arith.constant 0 : index
    %212 = vector.load %arg18[%211, %c0_107, %c0_108] : memref<4x8x128xf32, #tpu.memory_space<vmem>>, vector<1x8x128xf32>
    %213 = vector.shape_cast %212 : vector<1x8x128xf32> to vector<8x128xf32>
    %214 = vector.shape_cast %210 : vector<8x128xf32> to vector<1x8x128xf32>
    tpu.vector_store %arg18[%211, %c0_107, %c0_108], %214 {strides = array<i32>} : memref<4x8x128xf32, #tpu.memory_space<vmem>>, vector<1x8x128xf32>,
    %c4_i32 = arith.constant 4 : i32
    %c0_i32_109 = arith.constant 0 : i32
    %215 = arith.cmpi eq, %arg2, %c0_i32_109 : i32
    %216 = arith.extui %215 : i1 to i32
    %c0_i32_110 = arith.constant 0 : i32
    %217 = arith.cmpi ne, %216, %c0_i32_110 : i32
    scf.if %217 {
      %c0_111 = arith.constant 0 : index
      %c0_112 = arith.constant 0 : index
      %c0_113 = arith.constant 0 : index
      %218 = vector.load %arg3[%c0_111, %c0_112, %c0_113] : memref<1x8x32xf32, #tpu.memory_space<vmem>>, vector<1x8x32xf32>
      %219 = vector.shape_cast %218 : vector<1x8x32xf32> to vector<8x32xf32>
      %cst_114 = arith.constant 0.000000e+00 : f32
      %220 = vector.broadcast %cst_114 : f32 to vector<8x32xf32>
      %c0_115 = arith.constant 0 : index
      %c0_116 = arith.constant 0 : index
      %221 = vector.load %arg11[%c0_115, %c0_116] : memref<1x32xf32, #tpu.memory_space<vmem>>, vector<1x32xf32>
      %222 = vector.broadcast %221 : vector<1x32xf32> to vector<8x32xf32>
      %223 = arith.addf %220, %222 : vector<8x32xf32>
      %c0_i32_117 = arith.constant 0 : i32
      %224 = arith.index_cast %c0_i32_117 : i32 to index
      %c0_118 = arith.constant 0 : index
      %c0_119 = arith.constant 0 : index
      %225 = vector.load %arg17[%224, %c0_118, %c0_119] : memref<4x8x1xf32, #tpu.memory_space<vmem>>, vector<1x8x1xf32>
      %226 = vector.shape_cast %225 : vector<1x8x1xf32> to vector<8x1xf32>
      %227 = tpu.reciprocal %226 : vector<8x1xf32> -> vector<8x1xf32>
      %228 = arith.index_cast %c0_i32_117 : i32 to index
      %c0_120 = arith.constant 0 : index
      %c0_121 = arith.constant 0 : index
      %229 = vector.load %arg18[%228, %c0_120, %c0_121] : memref<4x8x128xf32, #tpu.memory_space<vmem>>, vector<1x8x128xf32>
      %230 = vector.shape_cast %229 : vector<1x8x128xf32> to vector<8x128xf32>
      %231 = vector.broadcast %227 : vector<8x1xf32> to vector<8x128xf32>
      %232 = arith.mulf %230, %231 : vector<8x128xf32>
      %233 = arith.index_cast %c0_i32_117 : i32 to index
      %c0_122 = arith.constant 0 : index
      %c0_123 = arith.constant 0 : index
      %234 = vector.load %arg10[%233, %c0_122, %c0_123] : memref<4x128x32xf32, #tpu.memory_space<vmem>>, vector<1x128x32xf32>
      %235 = vector.shape_cast %234 : vector<1x128x32xf32> to vector<128x32xf32>
      %cst_124 = arith.constant dense<0.000000e+00> : vector<8x32xf32>
      %236 = tpu.matmul %232, %235, %cst_124 {dimension_numbers = #tpu.dot_dimension_numbers<[1], [0], [0], [1], [0, 0, 1, 1], [], []>} : vector<8x128xf32>, vector<128x32xf32>, vector<8x32xf32> -> vector<8x32xf32>
      %237 = arith.addf %223, %236 : vector<8x32xf32>
      %c1_i32_125 = arith.constant 1 : i32
      %238 = arith.index_cast %c1_i32_125 : i32 to index
      %c0_126 = arith.constant 0 : index
      %c0_127 = arith.constant 0 : index
      %239 = vector.load %arg17[%238, %c0_126, %c0_127] : memref<4x8x1xf32, #tpu.memory_space<vmem>>, vector<1x8x1xf32>
      %240 = vector.shape_cast %239 : vector<1x8x1xf32> to vector<8x1xf32>
      %241 = tpu.reciprocal %240 : vector<8x1xf32> -> vector<8x1xf32>
      %242 = arith.index_cast %c1_i32_125 : i32 to index
      %c0_128 = arith.constant 0 : index
      %c0_129 = arith.constant 0 : index
      %243 = vector.load %arg18[%242, %c0_128, %c0_129] : memref<4x8x128xf32, #tpu.memory_space<vmem>>, vector<1x8x128xf32>
      %244 = vector.shape_cast %243 : vector<1x8x128xf32> to vector<8x128xf32>
      %245 = vector.broadcast %241 : vector<8x1xf32> to vector<8x128xf32>
      %246 = arith.mulf %244, %245 : vector<8x128xf32>
      %247 = arith.index_cast %c1_i32_125 : i32 to index
      %c0_130 = arith.constant 0 : index
      %c0_131 = arith.constant 0 : index
      %248 = vector.load %arg10[%247, %c0_130, %c0_131] : memref<4x128x32xf32, #tpu.memory_space<vmem>>, vector<1x128x32xf32>
      %249 = vector.shape_cast %248 : vector<1x128x32xf32> to vector<128x32xf32>
      %cst_132 = arith.constant dense<0.000000e+00> : vector<8x32xf32>
      %250 = tpu.matmul %246, %249, %cst_132 {dimension_numbers = #tpu.dot_dimension_numbers<[1], [0], [0], [1], [0, 0, 1, 1], [], []>} : vector<8x128xf32>, vector<128x32xf32>, vector<8x32xf32> -> vector<8x32xf32>
      %251 = arith.addf %237, %250 : vector<8x32xf32>
      %c2_i32_133 = arith.constant 2 : i32
      %252 = arith.index_cast %c2_i32_133 : i32 to index
      %c0_134 = arith.constant 0 : index
      %c0_135 = arith.constant 0 : index
      %253 = vector.load %arg17[%252, %c0_134, %c0_135] : memref<4x8x1xf32, #tpu.memory_space<vmem>>, vector<1x8x1xf32>
      %254 = vector.shape_cast %253 : vector<1x8x1xf32> to vector<8x1xf32>
      %255 = tpu.reciprocal %254 : vector<8x1xf32> -> vector<8x1xf32>
      %256 = arith.index_cast %c2_i32_133 : i32 to index
      %c0_136 = arith.constant 0 : index
      %c0_137 = arith.constant 0 : index
      %257 = vector.load %arg18[%256, %c0_136, %c0_137] : memref<4x8x128xf32, #tpu.memory_space<vmem>>, vector<1x8x128xf32>
      %258 = vector.shape_cast %257 : vector<1x8x128xf32> to vector<8x128xf32>
      %259 = vector.broadcast %255 : vector<8x1xf32> to vector<8x128xf32>
      %260 = arith.mulf %258, %259 : vector<8x128xf32>
      %261 = arith.index_cast %c2_i32_133 : i32 to index
      %c0_138 = arith.constant 0 : index
      %c0_139 = arith.constant 0 : index
      %262 = vector.load %arg10[%261, %c0_138, %c0_139] : memref<4x128x32xf32, #tpu.memory_space<vmem>>, vector<1x128x32xf32>
      %263 = vector.shape_cast %262 : vector<1x128x32xf32> to vector<128x32xf32>
      %cst_140 = arith.constant dense<0.000000e+00> : vector<8x32xf32>
      %264 = tpu.matmul %260, %263, %cst_140 {dimension_numbers = #tpu.dot_dimension_numbers<[1], [0], [0], [1], [0, 0, 1, 1], [], []>} : vector<8x128xf32>, vector<128x32xf32>, vector<8x32xf32> -> vector<8x32xf32>
      %265 = arith.addf %251, %264 : vector<8x32xf32>
      %c3_i32_141 = arith.constant 3 : i32
      %266 = arith.index_cast %c3_i32_141 : i32 to index
      %c0_142 = arith.constant 0 : index
      %c0_143 = arith.constant 0 : index
      %267 = vector.load %arg17[%266, %c0_142, %c0_143] : memref<4x8x1xf32, #tpu.memory_space<vmem>>, vector<1x8x1xf32>
      %268 = vector.shape_cast %267 : vector<1x8x1xf32> to vector<8x1xf32>
      %269 = tpu.reciprocal %268 : vector<8x1xf32> -> vector<8x1xf32>
      %270 = arith.index_cast %c3_i32_141 : i32 to index
      %c0_144 = arith.constant 0 : index
      %c0_145 = arith.constant 0 : index
      %271 = vector.load %arg18[%270, %c0_144, %c0_145] : memref<4x8x128xf32, #tpu.memory_space<vmem>>, vector<1x8x128xf32>
      %272 = vector.shape_cast %271 : vector<1x8x128xf32> to vector<8x128xf32>
      %273 = vector.broadcast %269 : vector<8x1xf32> to vector<8x128xf32>
      %274 = arith.mulf %272, %273 : vector<8x128xf32>
      %275 = arith.index_cast %c3_i32_141 : i32 to index
      %c0_146 = arith.constant 0 : index
      %c0_147 = arith.constant 0 : index
      %276 = vector.load %arg10[%275, %c0_146, %c0_147] : memref<4x128x32xf32, #tpu.memory_space<vmem>>, vector<1x128x32xf32>
      %277 = vector.shape_cast %276 : vector<1x128x32xf32> to vector<128x32xf32>
      %cst_148 = arith.constant dense<0.000000e+00> : vector<8x32xf32>
      %278 = tpu.matmul %274, %277, %cst_148 {dimension_numbers = #tpu.dot_dimension_numbers<[1], [0], [0], [1], [0, 0, 1, 1], [], []>} : vector<8x128xf32>, vector<128x32xf32>, vector<8x32xf32> -> vector<8x32xf32>
      %279 = arith.addf %265, %278 : vector<8x32xf32>
      %c4_i32_149 = arith.constant 4 : i32
      %280 = arith.addf %279, %219 : vector<8x32xf32>
      %cst_150 = arith.constant dense<0.000000e+00> : vector<8xf32>
      %281 = vector.multi_reduction <add>, %280, %cst_150 [1] : vector<8x32xf32> to vector<8xf32>
      %282 = vector.shape_cast %281 : vector<8xf32> to vector<8x1xf32>
      %cst_151 = arith.constant 3.200000e+01 : f32
      %283 = vector.broadcast %cst_151 : f32 to vector<8x1xf32>
      %284 = arith.divf %282, %283 : vector<8x1xf32>
      %285 = vector.broadcast %284 : vector<8x1xf32> to vector<8x32xf32>
      %286 = arith.subf %280, %285 : vector<8x32xf32>
      %287 = arith.mulf %286, %286 : vector<8x32xf32>
      %cst_152 = arith.constant dense<0.000000e+00> : vector<8xf32>
      %288 = vector.multi_reduction <add>, %287, %cst_152 [1] : vector<8x32xf32> to vector<8xf32>
      %289 = vector.shape_cast %288 : vector<8xf32> to vector<8x1xf32>
      %cst_153 = arith.constant 3.100000e+01 : f32
      %290 = vector.broadcast %cst_153 : f32 to vector<8x1xf32>
      %291 = arith.divf %289, %290 : vector<8x1xf32>
      %292 = math.sqrt %291 : vector<8x1xf32>
      %cst_154 = arith.constant 1.000000e-03 : f32
      %293 = vector.broadcast %cst_154 : f32 to vector<8x1xf32>
      %294 = arith.addf %292, %293 : vector<8x1xf32>
      %295 = tpu.reciprocal %294 : vector<8x1xf32> -> vector<8x1xf32>
      %296 = vector.broadcast %284 : vector<8x1xf32> to vector<8x32xf32>
      %297 = arith.subf %280, %296 : vector<8x32xf32>
      %298 = vector.broadcast %295 : vector<8x1xf32> to vector<8x32xf32>
      %299 = arith.mulf %297, %298 : vector<8x32xf32>
      %c0_155 = arith.constant 0 : index
      %c0_156 = arith.constant 0 : index
      %300 = vector.load %arg12[%c0_155, %c0_156] : memref<1x32xf32, #tpu.memory_space<vmem>>, vector<1x32xf32>
      %301 = vector.broadcast %300 : vector<1x32xf32> to vector<8x32xf32>
      %302 = arith.mulf %299, %301 : vector<8x32xf32>
      %c0_157 = arith.constant 0 : index
      %c0_158 = arith.constant 0 : index
      %303 = vector.load %arg13[%c0_157, %c0_158] : memref<1x32xf32, #tpu.memory_space<vmem>>, vector<1x32xf32>
      %304 = vector.broadcast %303 : vector<1x32xf32> to vector<8x32xf32>
      %305 = arith.addf %302, %304 : vector<8x32xf32>
      %c0_159 = arith.constant 0 : index
      %c0_160 = arith.constant 0 : index
      %c0_161 = arith.constant 0 : index
      %306 = vector.load %arg14[%c0_159, %c0_160, %c0_161] : memref<1x8x32xf32, #tpu.memory_space<vmem>>, vector<1x8x32xf32>
      %307 = vector.shape_cast %306 : vector<1x8x32xf32> to vector<8x32xf32>
      %308 = vector.shape_cast %305 : vector<8x32xf32> to vector<1x8x32xf32>
      tpu.vector_store %arg14[%c0_159, %c0_160, %c0_161], %308 {strides = array<i32>} : memref<1x8x32xf32, #tpu.memory_space<vmem>>, vector<1x8x32xf32>,
    } else {
    }
    return
  }
  func.func @transform_0(%arg0: i32, %arg1: i32, %arg2: i32) -> (i32, i32, i32) {
    %c0_i32 = arith.constant 0 : i32
    %c0_i32_0 = arith.constant 0 : i32
    return %arg0, %arg1, %c0_i32 : i32, i32, i32
  }
  func.func @transform_1(%arg0: i32, %arg1: i32, %arg2: i32) -> (i32, i32, i32) {
    %c0_i32 = arith.constant 0 : i32
    %c0_i32_0 = arith.constant 0 : i32
    return %arg0, %arg2, %c0_i32 : i32, i32, i32
  }
  func.func @transform_2(%arg0: i32, %arg1: i32, %arg2: i32) -> (i32, i32, i32) {
    %c0_i32 = arith.constant 0 : i32
    %c0_i32_0 = arith.constant 0 : i32
    return %arg0, %arg2, %c0_i32 : i32, i32, i32
  }
  func.func @transform_3(%arg0: i32, %arg1: i32, %arg2: i32) -> (i32, i32, i32) {
    %c0_i32 = arith.constant 0 : i32
    return %arg0, %arg1, %arg2 : i32, i32, i32
  }
  func.func @transform_4(%arg0: i32, %arg1: i32, %arg2: i32) -> (i32, i32, i32) {
    %c0_i32 = arith.constant 0 : i32
    %c0_i32_0 = arith.constant 0 : i32
    %c0_i32_1 = arith.constant 0 : i32
    %c0_i32_2 = arith.constant 0 : i32
    return %c0_i32, %c0_i32_0, %c0_i32_1 : i32, i32, i32
  }
  func.func @transform_5(%arg0: i32, %arg1: i32, %arg2: i32) -> (i32, i32, i32) {
    %c0_i32 = arith.constant 0 : i32
    %c0_i32_0 = arith.constant 0 : i32
    %c0_i32_1 = arith.constant 0 : i32
    %c0_i32_2 = arith.constant 0 : i32
    return %c0_i32, %c0_i32_0, %c0_i32_1 : i32, i32, i32
  }
  func.func @transform_6(%arg0: i32, %arg1: i32, %arg2: i32) -> (i32, i32, i32) {
    %c0_i32 = arith.constant 0 : i32
    %c0_i32_0 = arith.constant 0 : i32
    %c0_i32_1 = arith.constant 0 : i32
    %c0_i32_2 = arith.constant 0 : i32
    return %c0_i32, %c0_i32_0, %c0_i32_1 : i32, i32, i32
  }
  func.func @transform_7(%arg0: i32, %arg1: i32, %arg2: i32) -> (i32, i32, i32) {
    %c0_i32 = arith.constant 0 : i32
    %c0_i32_0 = arith.constant 0 : i32
    %c0_i32_1 = arith.constant 0 : i32
    %c0_i32_2 = arith.constant 0 : i32
    return %c0_i32, %c0_i32_0, %c0_i32_1 : i32, i32, i32
  }
  func.func @transform_8(%arg0: i32, %arg1: i32, %arg2: i32) -> (i32, i32) {
    %c0_i32 = arith.constant 0 : i32
    %c0_i32_0 = arith.constant 0 : i32
    %c0_i32_1 = arith.constant 0 : i32
    return %c0_i32, %c0_i32_0 : i32, i32
  }
  func.func @transform_9(%arg0: i32, %arg1: i32, %arg2: i32) -> (i32, i32) {
    %c0_i32 = arith.constant 0 : i32
    %c0_i32_0 = arith.constant 0 : i32
    %c0_i32_1 = arith.constant 0 : i32
    return %c0_i32, %c0_i32_0 : i32, i32
  }
  func.func @transform_10(%arg0: i32, %arg1: i32, %arg2: i32) -> (i32, i32) {
    %c0_i32 = arith.constant 0 : i32
    %c0_i32_0 = arith.constant 0 : i32
    %c0_i32_1 = arith.constant 0 : i32
    return %c0_i32, %c0_i32_0 : i32, i32
  }
  func.func @transform_11(%arg0: i32, %arg1: i32, %arg2: i32) -> (i32, i32, i32) {
    %c0_i32 = arith.constant 0 : i32
    %c0_i32_0 = arith.constant 0 : i32
    return %arg0, %arg1, %c0_i32 : i32, i32, i32
  }
}

</mosaic_0001>

<bundles_post_ra>
// kernel: tpu_custom_call.1
= control target key start
LH: loop header
LB: loop body
LE: loop exit
PB: predicated region body
PF: predicated region fallthrough
CT: control target
= control target key end

     0   :  { %s4450_s0 = inlined_call_operand.vmem [shape: f32[2,8,32], index: 0, kind: input, shape index: {}]   ;;  %s4451_s1 = inlined_call_operand.vmem [shape: f32[2,8,32], index: 1, kind: input, shape index: {}]   ;;  %s4452_s2 = inlined_call_operand.vmem [shape: f32[2,8,32], index: 2, kind: input, shape index: {}]   ;;  %s4453_s3 = inlined_call_operand.vmem [shape: s8[2,8,8], index: 3, kind: input, shape index: {}]   ;;  %s4454_s4 = inlined_call_operand.vmem [shape: f32[4,32,128], index: 4, kind: input, shape index: {}]   ;;  %s4455_s5 = inlined_call_operand.vmem [shape: f32[4,32,128], index: 5, kind: input, shape index: {}]   ;;  %s4456_s6 = inlined_call_operand.vmem [shape: f32[4,32,128], index: 6, kind: input, shape index: {}]   ;;  %s4457_s7 = inlined_call_operand.vmem [shape: f32[4,128,32], index: 7, kind: input, shape index: {}]   ;;  %s4458_s8 = inlined_call_operand.vmem [shape: f32[1,32], index: 8, kind: input, shape index: {}]   ;;  %s4459_s9 = inlined_call_operand.vmem [shape: f32[1,32], index: 9, kind: input, shape index: {}]   ;;  %s4460_s10 = inlined_call_operand.vmem [shape: f32[1,32], index: 10, kind: input, shape index: {}]   ;;  %s4461_s11 = inlined_call_operand.hbm [shape: f32[2,8,32], index: 11, kind: output, shape index: {}]  }
   0x1   :  { %4463 = sst [smem:[#allocation10_spill]] %s4450_s0 }
   0x2   :  { %4464 = sst [smem:[#allocation11_spill]] %s4451_s1 }
   0x3   :  { %16 = vsyncpa [#allocation7], 0 }
   0x4   :  { %18 = vsyncpa [#allocation7 + $0x1], 0  ;;  %s3730_s17 = smov 0   ;;  %s3732_s18 = smov 0  }
   0x5   :  { %s3734_s19 = smov 0   ;;  %s3736_s20 = smov 0  }
   0x6   :  { %s3738_s21 = smov 0   ;;  %s3740_s22 = smov 0  }
   0x7 LB: > { %s2753_s23 = sadd.s32 4294967295, %s3662_s22   ;;  %s2754_s24 = sadd.s32 4294967294, %s3662_s22   ;;  %s3662_s22 = sphi %s3740_s22, %s24_s22   ;;  %s3658_s21 = sphi %s3738_s21, %s4477_s21   ;;  %s3654_s20 = sphi %s3736_s20, %s4476_s20   ;;  %s3650_s19 = sphi %s3734_s19, %s4475_s19   ;;  %s3646_s18 = sphi %s3732_s18, %s4474_s18   ;;  %s3642_s17 = sphi %s3730_s17, %s4473_s17  }
   0x8   : > { %s43_s25 = sadd.s32 1, %s3658_s21  ;;  %s313_s26 = sadd.s32 1, %s3650_s19 }
   0x9   : > { %p45_p0 = scmp.ge.s32.totalorder %s43_s25, 2  ;;  %p323_p1 = scmp.ne.s32.totalorder %s3650_s19, %s3646_s18 }
   0xa   : > { %p324_p2 = scmp.eq.s32.totalorder %s2753_s23, 1  ;;  %p329_p3 = scmp.ne.s32.totalorder %s3646_s18, %s3642_s17 }
   0xb   : > { %s4479_s25 = smov (%p45_p0, %s43_s25), 0  ;;  %p330_p5 = scmp.eq.s32.totalorder %s2754_s24, 1 }
   0xc   : > { %4465 = sst [smem:[#allocation9_spill]] %s4479_s25  ;;  %p3770_p4 = por %p324_p2, %p323_p1 }
   0xd   : > { %s308_s28 = ssub.s32 %s3658_s21, %s4479_s25  ;;  %p2757_p6 = scmp.ge.s32.totalorder %s3662_s22, 1 }
   0xe   : > { %p311_p7 = scmp.eq.s32.totalorder %s308_s28, 0  ;;  %p3777_p8 = por %p330_p5, %p329_p3 }
   0xf   : > { %p412_p9 = scmp.lt.s32.totalorder %s3662_s22, 3 }
  0x10   : > { %s3783_s30 = scalar_select %p311_p7, %s3650_s19, %s313_s26  }
  0x11   : > { %p413_p10 = pnand %p2757_p6, %p412_p9 }
  0x12   : > { %v516_v0 = vld [vmem:[%s4454_s4] sm:$0xff] (!%p413_p10)  ;;  %v517_v1 = vld [vmem:[%s4454_s4 + $0x8] sm:$0xff] (!%p413_p10)  ;;  %v518_v2 = vld [vmem:[%s4454_s4 + $0x10] sm:$0xff] (!%p413_p10)  ;;  %v3664_v3 = vmov (!%p413_p10), 0.0|0.0   ;;  %vm3665_vm0 = vmmov (!%p413_p10), 0   ;;  %v3666_v6 = vmov (!%p413_p10), 0.0  }
  0x13   : > { %416 = sbr.rel (%p413_p10) target bundleno = 2284 (0x8ec), region = 64  ;;  %3326 = vmatprep.subr.bf16.mxu0 (!%p413_p10), %v3664_v3  ;;  %v3327_v4 = vpack.c.bf16 (!%p413_p10), %v517_v1, %v516_v0  ;;  %v519_v5 = vld [vmem:[%s4454_s4 + $0x18] sm:$0xff] (!%p413_p10)  ;;  %3022 = vmatprep.mubr.msk.f32.mxu0 (!%p413_p10), %vm3665_vm0, %v3666_v6  ;;  %p478_p11 = scmp.lt.s32.totalorder (!%p413_p10), %s3654_s20, 1  ;;  %v2769_v8 = vld [vmem:[%s4454_s4 + $0x40] sm:$0xff] (!%p413_p10)  ;;  %v2770_v9 = vld [vmem:[%s4454_s4 + $0x48] sm:$0xff] (!%p413_p10)  ;;  %vm520_vm1 = vcmask (!%p413_p10), 261120  }
  0x14   : > { %3332 = vmatprep.subr.bf16.mxu1 (!%p413_p10), %v3664_v3  ;;  %3033 = vmatprep.mubr.msk.f32.mxu1 (!%p413_p10), %vm3665_vm0, %v3666_v6  ;;  %v3330_v7 = vpack.c.bf16 (!%p413_p10), %v519_v5, %v518_v2  ;;  %s4468_s0 = sld [smem:[#allocation10_spill]] (!%p413_p10)  ;;  %v3339_v11 = vpack.c.bf16 (!%p413_p10), %v2770_v9, %v2769_v8  ;;  %v2771_v12 = vld [vmem:[%s4454_s4 + $0x50] sm:$0xff] (!%p413_p10)  ;;  %v2772_v13 = vld [vmem:[%s4454_s4 + $0x58] sm:$0xff] (!%p413_p10)  ;;  %v843_v15 = vld [vmem:[%s4455_s5] sm:$0xff] (!%p413_p10)  ;;  %s4469_s1 = sld [smem:[#allocation11_spill]] (!%p413_p10)  ;;  %v3667_v40 = vmov (!%p413_p10), 0  }
  0x15   : > { %3328 = vmatpush3.bf16.msra.mxu0 (!%p413_p10), %v3327_v4  ;;  %v3342_v14 = vpack.c.bf16 (!%p413_p10), %v2772_v13, %v2771_v12  ;;  %v844_v16 = vld [vmem:[%s4455_s5 + $0x8] sm:$0xff] (!%p413_p10)  ;;  %v845_v18 = vld [vmem:[%s4455_s5 + $0x10] sm:$0xff] (!%p413_p10)  ;;  %v846_v19 = vld [vmem:[%s4455_s5 + $0x18] sm:$0xff] (!%p413_p10)  ;;  %3554 = vset.pattern.permute.xlu0 (!%p413_p10), %v3667_v40  ;;  %vm826_vm2 = vcmask (!%p413_p10), 7168   ;;  %v3668_v48 = vmov (!%p413_p10), -inf   ;;  %vm1076_vm5 = vcmask (!%p413_p10), 64512  }
  0x16   : > { %3329 = vmatprep.subr.bf16.mxu0 (!%p413_p10), %v3664_v3  ;;  %v3351_v17 = vpack.c.bf16 (!%p413_p10), %v844_v16, %v843_v15  ;;  %v3354_v20 = vpack.c.bf16 (!%p413_p10), %v846_v19, %v845_v18  ;;  %v2764_v22 = vld [vmem:[%s4454_s4 + $0x20] sm:$0xff] (!%p413_p10)  ;;  %v2765_v23 = vld [vmem:[%s4454_s4 + $0x28] sm:$0xff] (!%p413_p10)  ;;  %v2766_v25 = vld [vmem:[%s4454_s4 + $0x30] sm:$0xff] (!%p413_p10)  ;;  %3555 = vset.pattern.permute.xlu1 (!%p413_p10), %v3667_v40  ;;  %827 = vst.msk [vmem:[#allocation3] sm:$0xff] (!%p413_p10), %vm826_vm2, %v3668_v48 }
  0x17   : > { %v3333_v24 = vpack.c.bf16 (!%p413_p10), %v2765_v23, %v2764_v22  ;;  %v2767_v26 = vld [vmem:[%s4454_s4 + $0x38] sm:$0xff] (!%p413_p10)  ;;  %v2782_v32 = vld [vmem:[%s4455_s5 + $0x20] sm:$0xff] (!%p413_p10)  ;;  %v2783_v33 = vld [vmem:[%s4455_s5 + $0x28] sm:$0xff] (!%p413_p10)  ;;  %828 = vst.msk [vmem:[#allocation3 + $0x8] sm:$0xff] (!%p413_p10), %vm826_vm2, %v3668_v48 }
  0x18   : > { %v3336_v27 = vpack.c.bf16 (!%p413_p10), %v2767_v26, %v2766_v25  ;;  %v3363_v36 = vpack.c.bf16 (!%p413_p10), %v2783_v33, %v2782_v32  ;;  %v2784_v37 = vld [vmem:[%s4455_s5 + $0x30] sm:$0xff] (!%p413_p10)  ;;  %v2785_v38 = vld [vmem:[%s4455_s5 + $0x38] sm:$0xff] (!%p413_p10)  ;;  %v2774_v43 = vld [vmem:[%s4454_s4 + $0x60] sm:$0xff] (!%p413_p10)  ;;  %829 = vst.msk [vmem:[#allocation3 + $0x10] sm:$0xff] (!%p413_p10), %vm826_vm2, %v3668_v48 }
  0x19   : > { %3331 = vmatpush3.bf16.msra.mxu0 (!%p413_p10), %v3330_v7  ;;  %3334 = vmatpush3.bf16.msra.mxu1 (!%p413_p10), %v3333_v24  ;;  %v3366_v39 = vpack.c.bf16 (!%p413_p10), %v2785_v38, %v2784_v37  ;;  %v2775_v44 = vld [vmem:[%s4454_s4 + $0x68] sm:$0xff] (!%p413_p10)  ;;  %v2776_v45 = vld [vmem:[%s4454_s4 + $0x70] sm:$0xff] (!%p413_p10)  ;;  %v2777_v47 = vld [vmem:[%s4454_s4 + $0x78] sm:$0xff] (!%p413_p10)  ;;  %830 = vst.msk [vmem:[#allocation3 + $0x18] sm:$0xff] (!%p413_p10), %vm826_vm2, %v3668_v48 }
  0x1a   : > { %s3805_s28 = scalar_select %p478_p11, %s3654_s20, 1  ;;  %3338 = vmatprep.subr.bf16.mxu0 %v3664_v3  ;;  %3335 = vmatprep.subr.bf16.mxu1 %v3664_v3  ;;  %v3345_v46 = vpack.c.bf16 %v2775_v44, %v2774_v43  ;;  %831 = vst.msk [vmem:[#allocation4] sm:$0xff] %vm826_vm2, %v3666_v6  ;;  %832 = vst.msk [vmem:[#allocation4 + $0x8] sm:$0xff] %vm826_vm2, %v3666_v6  ;;  %v3348_v49 = vpack.c.bf16 %v2777_v47, %v2776_v45  ;;  %v921_v50 = vld [vmem:[%s4456_s6] sm:$0xff]  ;;  %v922_v51 = vld [vmem:[%s4456_s6 + $0x8] sm:$0xff] }
  0x1b   : > { %833 = vst.msk [vmem:[#allocation4 + $0x10] sm:$0xff] %vm826_vm2, %v3666_v6  ;;  %834 = vst.msk [vmem:[#allocation4 + $0x18] sm:$0xff] %vm826_vm2, %v3666_v6  ;;  %v3357_v52 = vpack.c.bf16 %v922_v51, %v921_v50  ;;  %v923_v53 = vld [vmem:[%s4456_s6 + $0x10] sm:$0xff]  ;;  %v924_v54 = vld [vmem:[%s4456_s6 + $0x18] sm:$0xff] }
  0x1c   : > { %s3815_s16 = sshll.u32 %s3805_s28, 3  ;;  %v3360_v55 = vpack.c.bf16 %v924_v54, %v923_v53  ;;  %s2762_s14 = sshll.u32 %s3805_s28, 1  ;;  %v2793_v1 = vld [vmem:[%s4455_s5 + $0x40] sm:$0xff]  ;;  %v2794_v2 = vld [vmem:[%s4455_s5 + $0x48] sm:$0xff]  ;;  %v2795_v8 = vld [vmem:[%s4455_s5 + $0x50] sm:$0xff] }
  0x1d   : > { %s3821_s26 = scalar_lea.vmem %s4468_s0, %s3815_s16  ;;  %s491_s12 = scalar_lea.vmem %s4469_s1, %s3815_s16  ;;  %3337 = vmatpush3.bf16.msra.mxu1 %v3336_v27  ;;  %v3375_v7 = vpack.c.bf16 %v2794_v2, %v2793_v1  ;;  %v2796_v9 = vld [vmem:[%s4455_s5 + $0x58] sm:$0xff]  ;;  %v2804_v24 = vld [vmem:[%s4455_s5 + $0x60] sm:$0xff]  ;;  %v2805_v25 = vld [vmem:[%s4455_s5 + $0x68] sm:$0xff] }
  0x1e   : > { %v3824_v10 = vld [vmem:[%s3821_s26] sm:$0xff]  ;;  %3344 = vmatprep.subr.bf16.mxu1 %v3664_v3  ;;  %s498_s13 = scalar_lea.vmem %s4452_s2, %s3815_s16  ;;  %s508_s24 = scalar_lea.vmem %s4453_s3, %s2762_s14  ;;  %v2790_v38 = vld [vmem:[%s4456_s6 + $0x38] sm:$0xff] }
  0x1f   : > { %3023 = vmatmul.mubr.msk.f32.vlgmr.msra.gmra.mrb[0].mxu0 %vm520_vm1, %v3824_v10  ;;  %v3860_v21 = vld [vmem:[%s491_s12] sm:$0xff]  ;;  %s2867_s0 = sshll.u32 %s3654_s20, 7  ;;  %s3669_s20 = smov [#allocation6]  }
  0x20   : > { %3340 = vmatpush3.bf16.msra.mxu0 %v3339_v11  ;;  %3044 = vmatprep.mubr.msk.f32.mxu0 %vm3665_vm0, %v3666_v6  ;;  %v3955_v56 = vld [vmem:[%s498_s13] sm:$0xff]  ;;  %s4402_s15 = scalar_lea.hbm %s4461_s11, %s2867_s0 }
  0x21   : > { %3341 = vmatprep.subr.bf16.mxu0 %v3664_v3  ;;  %3034 = vmatmul.mubr.msk.f32.vlgmr.msra.gmra.mrb[0].mxu1 %vm520_vm1, %v3824_v10  ;;  %v839_v57 = vld [vmem:[%s508_s24] sm:$0x3] }
  0x22   : > { %3055 = vmatprep.mubr.msk.f32.mxu1 %vm3665_vm0, %v3666_v6  ;;  %3346 = vmatpush3.bf16.msra.mxu1 %v3345_v46  ;;  %vm840_vm3 = vnez %v839_v57  ;;  %v3994_v11 = vld [vmem:[#allocation3] sm:$0xff] }
  0x23   : > { %3347 = vmatprep.subr.bf16.mxu1 %v3664_v3  ;;  %v1069_v58 = vsel %vm840_vm3, 16843009, %v3667_v40  ;;  %v2798_v57 = vld [vmem:[%s4456_s6 + $0x40] sm:$0xff] }
  0x24   : > { %3343 = vmatpush3.bf16.msra.mxu0 %v3342_v14  ;;  %v1070_v59 = vunpack.c.0.s8 %v1069_v58  ;;  %v2799_v58 = vld [vmem:[%s4456_s6 + $0x48] sm:$0xff]  ;;  %v2809_v60 = vld [vmem:[%s4456_s6 + $0x60] sm:$0xff] }
  0x25   : > { %3350 = vmatprep.subr.bf16.mxu0 %v3664_v3 }
  0x26   : > { %3349 = vmatpush3.bf16.msra.mxu1 %v3348_v49  ;;  %vm3966_vm4 = vcmp.ne.s32.totalorder %v1070_v59, 0 }
  0x27   : > { %3045 = vmatmul.mubr.msk.f32.vlgmr.msra.gmra.mrb[2].mxu0 %vm520_vm1, %v3824_v10  ;;  %3356 = vmatprep.subr.bf16.mxu1 %v3664_v3 }
  0x28   : > { %3352 = vmatpush3.bf16.msra.mxu0 %v3351_v17  ;;  %3066 = vmatprep.mubr.msk.f32.mxu0 %vm3665_vm0, %v3666_v6 }
  0x29   : > { %3353 = vmatprep.subr.bf16.mxu0 %v3664_v3  ;;  %3056 = vmatmul.mubr.msk.f32.vlgmr.msra.gmra.mrb[2].mxu1 %vm520_vm1, %v3824_v10  ;;  %v3378_v10 = vpack.c.bf16 %v2796_v9, %v2795_v8 }
  0x2a   : > { %3358 = vmatpush3.bf16.msra.mxu1 %v3357_v52  ;;  %3077 = vmatprep.mubr.msk.f32.mxu1 %vm3665_vm0, %v3666_v6 }
  0x2b   : > { %3359 = vmatprep.subr.bf16.mxu1 %v3664_v3 }
  0x2c   : > { %3355 = vmatpush3.bf16.msra.mxu0 %v3354_v20 }
  0x2d   : > { %3080 = vmatprep.subr.mxu0 %v3666_v6 }
  0x2e   : > { %3361 = vmatpush3.bf16.msra.mxu1 %v3360_v55 }
  0x2f   : > { %3067 = vmatmul.mubr.msk.f32.vlgmr.msra.gmra.mrb[4].mxu0 %vm520_vm1, %v3860_v21  ;;  %3085 = vmatprep.subr.mxu1 %v3666_v6 }
  0x30   : > { %3082 = vmatprep.mubr.msk.f32.mxu0 %vm3665_vm0, %v3666_v6 }
  0x31   : > { %3078 = vmatmul.mubr.msk.f32.vlgmr.msra.gmra.mrb[4].mxu1 %vm520_vm1, %v3955_v56 }
  0x32   : > { %3087 = vmatprep.mubr.msk.f32.mxu1 %vm3665_vm0, %v3666_v6 }
  0xf2   : > { %v590_v28 = vpop.f32.mrb[0].mxu0 }
  0xf3   : > { %v3024_v29 = vpop.f32.mrb[1].mxu0 }
  0xf4   : > { %v666_v41 = vpop.f32.mrb[0].mxu1  ;;  %v2806_v29 = vld [vmem:[%s4455_s5 + $0x70] sm:$0xff] }
  0xf5   : > { %v3035_v42 = vpop.f32.mrb[1].mxu1 }
  0xfa   : > { %v3885_v30 = vpop.f32.mrb[2].mxu0 }
  0xfb   : > { %v3046_v31 = vpop.f32.mrb[3].mxu0 }
  0xfc   : > { %v820_v15 = vpop.f32.mrb[2].mxu1  ;;  %v2807_v31 = vld [vmem:[%s4455_s5 + $0x78] sm:$0xff] }
  0xfd   : > { %v3057_v16 = vpop.f32.mrb[3].mxu1  ;;  %v3390_v32 = vpack.c.bf16 %v2807_v31, %v2806_v29 }
 0x102   : > { %v917_v34 = vpop.f32.mrb[4].mxu0 }
 0x103   : > { %v3068_v35 = vpop.f32.mrb[5].mxu0  ;;  %3081 = vmatpush3.xpose.msra.mxu0 %v917_v34 }
 0x104   : > { %3362 = vmatprep.subr.bf16.mxu0 %v3664_v3  ;;  %v994_v17 = vpop.f32.mrb[4].mxu1 }
 0x105   : > { %3086 = vmatpush3.msra.mxu1 %v994_v17  ;;  %v3079_v18 = vpop.f32.mrb[5].mxu1 }
 0x106   : > { %3083 = vmatmul.mubr.f32.vlgmr.msra.gmra.mrb[6].mxu0 %v590_v28  ;;  %3368 = vmatprep.subr.bf16.mxu1 %v3664_v3  ;;  %v3387_v28 = vpack.c.bf16 %v2805_v25, %v2804_v24 }
 0x107   : > { %3364 = vmatpush3.bf16.msra.mxu0 %v3363_v36  ;;  %3098 = vmatprep.mubr.msk.f32.mxu0 %vm3665_vm0, %v3666_v6  ;;  %v2788_v36 = vld [vmem:[%s4456_s6 + $0x28] sm:$0xff] }
 0x108   : > { %3365 = vmatprep.subr.bf16.mxu0 %v3664_v3 }
 0x10b   : > { %3367 = vmatpush3.bf16.msra.mxu0 %v3366_v39 }
 0x10c   : > { %3112 = vmatprep.subr.mxu0 %v3666_v6 }
 0x10e   : > { %3099 = vmatmul.mubr.msk.f32.vlgmr.msra.gmra.mrb[8].mxu0 %vm520_vm1, %v3860_v21 }
 0x10f   : > { %3114 = vmatprep.mubr.msk.f32.mxu0 %vm3665_vm0, %v3666_v6 }
 0x1d9   : > { %v1065_v61 = vpop.f32.mrb[6].mxu0 }
 0x1da   : > { %v1072_v62 = vsel %vm3966_vm4, -1e+30, %v1065_v61  ;;  %v3084_v63 = vpop.f32.mrb[7].mxu0  ;;  %v3381_v61 = vpack.c.bf16 %v2799_v58, %v2798_v57 }
 0x1db   : > { %v1077_v0 = vsel %vm1076_vm5, %v1072_v62, -inf  ;;  %v2800_v63 = vld [vmem:[%s4456_s6 + $0x50] sm:$0xff] }
 0x1dc   : > { %1078 = vmax.xlane.f32.xlu0 %v1077_v0  ;;  %v2801_v0 = vld [vmem:[%s4456_s6 + $0x58] sm:$0xff] }
 0x1dd   : > { %v3384_v2 = vpack.c.bf16 %v2801_v0, %v2800_v63  ;;  %v2198_v63 = vld [vmem:[%s4457_s7] sm:$0xff]  ;;  %v2199_v0 = vld [vmem:[%s4457_s7 + $0x8] sm:$0xff] }
 0x1e1   : > { %v1252_v4 = vpop.f32.mrb[8].mxu0 }
 0x1e2   : > { %v3100_v5 = vpop.f32.mrb[9].mxu0  ;;  %3113 = vmatpush3.xpose.msra.mxu0 %v1252_v4  ;;  %v1737_v4 = vld [vmem:[#allocation3 + $0x10] sm:$0xff] }
 0x1e3   : > { %3374 = vmatprep.subr.bf16.mxu0 %v3664_v3 }
 0x1e5   : > { %3115 = vmatmul.mubr.f32.vlgmr.msra.gmra.mrb[10].mxu0 %v666_v41  ;;  %v4054_v41 = vld [vmem:[#allocation3 + $0x8] sm:$0xff] }
 0x1e6   : > { %3376 = vmatpush3.bf16.msra.mxu0 %v3375_v7  ;;  %3130 = vmatprep.mubr.msk.f32.mxu0 %vm3665_vm0, %v3666_v6 }
 0x1e7   : > { %3377 = vmatprep.subr.bf16.mxu0 %v3664_v3 }
 0x1ea   : > { %3379 = vmatpush3.bf16.msra.mxu0 %v3378_v10 }
 0x1eb   : > { %3144 = vmatprep.subr.mxu0 %v3666_v6 }
 0x1ed   : > { %3131 = vmatmul.mubr.msk.f32.vlgmr.msra.gmra.mrb[12].mxu0 %vm520_vm1, %v3860_v21 }
 0x1ee   : > { %3146 = vmatprep.mubr.msk.f32.mxu0 %vm3665_vm0, %v3666_v6 }
 0x269   : > { %v1079_v12 = vpop.xlane.xlu0 %1078 }
 0x26a   : > { %v3997_v13 = vmax.f32 %v3994_v11, %v1079_v12 }
 0x26c   : > { %v1081_v14 = vsub.f32 %v3994_v11, %v3997_v13  ;;  %1093 = vst.msk [vmem:[#allocation3] sm:$0xff] %vm826_vm2, %v3997_v13  ;;  %1086 = vperm.xlu0 %3554, %v3997_v13   ;;  %v2201_v11 = vld [vmem:[%s4457_s7 + $0x18] sm:$0xff]  ;;  %v2816_v13 = vld [vmem:[%s4457_s7 + $0x80] sm:$0xff] }
 0x2b8   : > { %v1399_v19 = vpop.f32.mrb[10].mxu0 }
 0x2b9   : > { %v1403_v20 = vsel %vm3966_vm4, -1e+30, %v1399_v19  ;;  %v3116_v22 = vpop.f32.mrb[11].mxu0 }
 0x2ba   : > { %v1410_v23 = vsel %vm1076_vm5, %v1403_v20, -inf }
 0x2bb   : > { %1411 = vmax.xlane.f32.xlu1 %v1410_v23  ;;  %v2810_v23 = vld [vmem:[%s4456_s6 + $0x68] sm:$0xff] }
 0x2bc   : > { %v3393_v25 = vpack.c.bf16 %v2810_v23, %v2809_v60  ;;  %v2205_v60 = vld [vmem:[%s4457_s7 + $0x38] sm:$0xff] }
 0x2c0   : > { %v1584_v26 = vpop.f32.mrb[12].mxu0 }
 0x2c1   : > { %v3132_v27 = vpop.f32.mrb[13].mxu0  ;;  %3145 = vmatpush3.xpose.msra.mxu0 %v1584_v26 }
 0x2c2   : > { %3386 = vmatprep.subr.bf16.mxu0 %v3664_v3  ;;  %v2811_v27 = vld [vmem:[%s4456_s6 + $0x70] sm:$0xff] }
 0x2c4   : > { %3147 = vmatmul.mubr.f32.vlgmr.msra.gmra.mrb[14].mxu0 %v3885_v30  ;;  %v2787_v30 = vld [vmem:[%s4456_s6 + $0x20] sm:$0xff] }
 0x2c5   : > { %3388 = vmatpush3.bf16.msra.mxu0 %v3387_v28  ;;  %3162 = vmatprep.mubr.msk.f32.mxu0 %vm3665_vm0, %v3666_v6  ;;  %v3369_v37 = vpack.c.bf16 %v2788_v36, %v2787_v30  ;;  %v2812_v28 = vld [vmem:[%s4456_s6 + $0x78] sm:$0xff]  ;;  %v1407_v36 = vld [vmem:[#allocation4 + $0x8] sm:$0xff] }
 0x2c6   : > { %3389 = vmatprep.subr.bf16.mxu0 %v3664_v3 }
 0x2c9   : > { %3391 = vmatpush3.bf16.msra.mxu0 %v3390_v32  ;;  %v3396_v32 = vpack.c.bf16 %v2812_v28, %v2811_v27  ;;  %v2207_v28 = vld [vmem:[%s4457_s7 + $0x48] sm:$0xff] }
 0x2ca   : > { %3176 = vmatprep.subr.mxu0 %v3666_v6 }
 0x2cc   : > { %3163 = vmatmul.mubr.msk.f32.vlgmr.msra.gmra.mrb[16].mxu0 %vm520_vm1, %v3860_v21  ;;  %v2789_v21 = vld [vmem:[%s4456_s6 + $0x30] sm:$0xff] }
 0x2cd   : > { %3178 = vmatprep.mubr.msk.f32.mxu0 %vm3665_vm0, %v3666_v6  ;;  %v3372_v40 = vpack.c.bf16 %v2790_v38, %v2789_v21 }
 0x2eb   : > { %v1087_v33 = vpop.permute.xlu0 %1086 }
 0x2ec   : > { %v1089_v34 = vsub.f32 %v1072_v62, %v1087_v33 }
 0x2ee   : > { %v1090_v35 = vmul.f32 1.442695, %v1089_v34  ;;  %v2069_v34 = vld [vmem:[#allocation3 + $0x18] sm:$0xff] }
 0x2f0   : > { %3556 = vpow2.f32 %v1090_v35 }
 0x2fa   : > { %v4042_v39 = vpop.eup %3556 }
 0x2fb   : > { %3088 = vmatmul.mubr.msk.f32.vlgmr.msra.gmra.mrb[6].mxu1 %vm1076_vm5, %v4042_v39 }
 0x2fc   : > { %3370 = vmatpush3.bf16.msra.mxu1 %v3369_v37  ;;  %3109 = vmatprep.mubr.msk.f32.mxu1 %vm3665_vm0, %v3666_v6 }
 0x2fd   : > { %3371 = vmatprep.subr.bf16.mxu1 %v3664_v3 }
 0x300   : > { %3373 = vmatpush3.bf16.msra.mxu1 %v3372_v40 }
 0x301   : > { %3117 = vmatprep.subr.mxu1 %v3666_v6 }
 0x303   : > { %3110 = vmatmul.mubr.msk.f32.vlgmr.msra.gmra.mrb[8].mxu1 %vm520_vm1, %v3955_v56 }
 0x304   : > { %3119 = vmatprep.mubr.msk.f32.mxu1 %vm3665_vm0, %v3666_v6 }
 0x348   : > { %v1412_v42 = vpop.xlane.xlu1 %1411 }
 0x349   : > { %v4057_v43 = vmax.f32 %v4054_v41, %v1412_v42 }
 0x34b   : > { %v1414_v44 = vsub.f32 %v4054_v41, %v4057_v43  ;;  %1425 = vst.msk [vmem:[#allocation3 + $0x8] sm:$0xff] %vm826_vm2, %v4057_v43  ;;  %1419 = vperm.xlu1 %3555, %v4057_v43  }
 0x34d   : > { %v1415_v33 = vmul.f32 1.442695, %v1414_v44 }
 0x397   : > { %v1731_v45 = vpop.f32.mrb[14].mxu0 }
 0x398   : > { %v1735_v46 = vsel %vm3966_vm4, -1e+30, %v1731_v45  ;;  %v3148_v47 = vpop.f32.mrb[15].mxu0 }
 0x399   : > { %v1742_v48 = vsel %vm1076_vm5, %v1735_v46, -inf }
 0x39a   : > { %1743 = vmax.xlane.f32.xlu1 %v1742_v48 }
 0x39f   : > { %v1916_v49 = vpop.f32.mrb[16].mxu0 }
 0x3a0   : > { %v3164_v50 = vpop.f32.mrb[17].mxu0  ;;  %3177 = vmatpush3.xpose.msra.mxu0 %v1916_v49 }
 0x3a1   : > { %3398 = vmatprep.subr.bf16.mxu0 %v3664_v3 }
 0x3a3   : > { %3179 = vmatmul.mubr.f32.vlgmr.msra.gmra.mrb[18].mxu0 %v820_v15 }
 0x3a4   : > { %3218 = vmatprep.mubr.msk.f32.mxu0 %vm3665_vm0, %v3666_v6 }
 0x3ca   : > { %v1420_v51 = vpop.permute.xlu1 %1419 }
 0x3cb   : > { %v1422_v52 = vsub.f32 %v1403_v20, %v1420_v51 }
 0x3cd   : > { %v1423_v53 = vmul.f32 1.442695, %v1422_v52 }
 0x3ce   : > { %v4070_v54 = vpop.f32.mrb[6].mxu1 }
 0x3cf   : > { %3558 = vpow2.f32 %v1423_v53  ;;  %v3089_v55 = vpop.f32.mrb[7].mxu1 }
 0x3d6   : > { %v1327_v59 = vpop.f32.mrb[8].mxu1 }
 0x3d7   : > { %3118 = vmatpush3.msra.mxu1 %v1327_v59  ;;  %v3111_v62 = vpop.f32.mrb[9].mxu1 }
 0x3d8   : > { %3380 = vmatprep.subr.bf16.mxu1 %v3664_v3 }
 0x3d9   : > { %v3559_v1 = vpop.eup %3558 }
 0x3da   : > { %3120 = vmatmul.mubr.msk.f32.vlgmr.msra.gmra.mrb[10].mxu1 %vm1076_vm5, %v3559_v1  ;;  %v1427_v16 = vsel %vm1076_vm5, %v3559_v1, 0.0  ;;  %v2200_v1 = vld [vmem:[%s4457_s7 + $0x10] sm:$0xff] }
 0x3db   : > { %3382 = vmatpush3.bf16.msra.mxu1 %v3381_v61  ;;  %3141 = vmatprep.mubr.msk.f32.mxu1 %vm3665_vm0, %v3666_v6  ;;  %v1082_v61 = vmul.f32 1.442695, %v1081_v14  ;;  %v2817_v14 = vld [vmem:[%s4457_s7 + $0x88] sm:$0xff] }
 0x3dc   : > { %3383 = vmatprep.subr.bf16.mxu1 %v3664_v3 }
 0x3df   : > { %3385 = vmatpush3.bf16.msra.mxu1 %v3384_v2  ;;  %v3399_v2 = vpack.c.bf16 %v2199_v0, %v2198_v63  ;;  %v2071_v0 = vld [vmem:[#allocation4 + $0x18] sm:$0xff] }
 0x3e0   : > { %3149 = vmatprep.subr.mxu1 %v3666_v6 }
 0x3e1   : > { %3400 = vmatpush3.bf16.msra.mxu0 %v3399_v2 }
 0x3e2   : > { %3142 = vmatmul.mubr.msk.f32.vlgmr.msra.gmra.mrb[12].mxu1 %vm520_vm1, %v3955_v56  ;;  %3401 = vmatprep.subr.bf16.mxu0 %v3664_v3 }
 0x3e3   : > { %3151 = vmatprep.mubr.msk.f32.mxu1 %vm3665_vm0, %v3666_v6 }
 0x427   : > { %v1744_v5 = vpop.xlane.xlu1 %1743 }
 0x428   : > { %v1745_v7 = vmax.f32 %v1737_v4, %v1744_v5  ;;  %v2818_v5 = vld [vmem:[%s4457_s7 + $0x90] sm:$0xff] }
 0x42a   : > { %v1746_v8 = vsub.f32 %v1737_v4, %v1745_v7  ;;  %1757 = vst.msk [vmem:[#allocation3 + $0x10] sm:$0xff] %vm826_vm2, %v1745_v7  ;;  %1751 = vperm.xlu0 %3554, %v1745_v7   ;;  %v3423_v4 = vpack.c.bf16 %v2817_v14, %v2816_v13  ;;  %v3402_v7 = vpack.c.bf16 %v2201_v11, %v2200_v1 }
 0x42c   : > { %v1747_v43 = vmul.f32 1.442695, %v1746_v8  ;;  %v2819_v8 = vld [vmem:[%s4457_s7 + $0x98] sm:$0xff]  ;;  %3403 = vmatpush3.bf16.msra.mxu0 %v3402_v7 }
 0x42d   : > { %3404 = vmatprep.subr.bf16.mxu0 %v3664_v3 }
 0x476   : > { %v2063_v9 = vpop.f32.mrb[18].mxu0 }
 0x477   : > { %v4097_v10 = vsel %vm3966_vm4, -1e+30, %v2063_v9  ;;  %v3180_v12 = vpop.f32.mrb[19].mxu0  ;;  %v2202_v9 = vld [vmem:[%s4457_s7 + $0x20] sm:$0xff] }
 0x478   : > { %v2074_v15 = vsel %vm1076_vm5, %v4097_v10, -inf  ;;  %v3426_v12 = vpack.c.bf16 %v2819_v8, %v2818_v5  ;;  %v2833_v8 = vld [vmem:[%s4457_s7 + $0x108] sm:$0xff] }
 0x479   : > { %2075 = vmax.xlane.f32.xlu0 %v2074_v15  ;;  %v1074_v15 = vld [vmem:[#allocation4] sm:$0xff] }
 0x47d   : > { %1428 = vadd.xlane.f32.xlu0 %v1427_v16 }
 0x4a9   : > { %v1752_v17 = vpop.permute.xlu0 %1751 }
 0x4aa   : > { %v1754_v18 = vsub.f32 %v1735_v46, %v1752_v17  ;;  %v1739_v46 = vld [vmem:[#allocation4 + $0x10] sm:$0xff] }
 0x4ac   : > { %v1755_v19 = vmul.f32 1.442695, %v1754_v18 }
 0x4ad   : > { %v4102_v20 = vpop.f32.mrb[10].mxu1 }
 0x4ae   : > { %3560 = vpow2.f32 %v1755_v19  ;;  %v3121_v22 = vpop.f32.mrb[11].mxu1 }
 0x4af   : > { %3562 = vpow2.f32 %v1415_v33  ;;  %v2204_v22 = vld [vmem:[%s4457_s7 + $0x30] sm:$0xff] }
 0x4b0   : > { %v3408_v23 = vpack.c.bf16 %v2205_v60, %v2204_v22 }
 0x4b5   : > { %v1659_v24 = vpop.f32.mrb[12].mxu1 }
 0x4b6   : > { %3150 = vmatpush3.msra.mxu1 %v1659_v24  ;;  %v3143_v26 = vpop.f32.mrb[13].mxu1  ;;  %v2820_v24 = vld [vmem:[%s4457_s7 + $0xa0] sm:$0xff] }
 0x4b7   : > { %3392 = vmatprep.subr.bf16.mxu1 %v3664_v3  ;;  %v2206_v26 = vld [vmem:[%s4457_s7 + $0x40] sm:$0xff] }
 0x4b8   : > { %v3561_v29 = vpop.eup %3560 }
 0x4b9   : > { %3152 = vmatmul.mubr.msk.f32.vlgmr.msra.gmra.mrb[14].mxu1 %vm1076_vm5, %v3561_v29  ;;  %v1759_v31 = vsel %vm1076_vm5, %v3561_v29, 0.0  ;;  %v3563_v35 = vpop.eup %3562  ;;  %v2822_v29 = vld [vmem:[%s4457_s7 + $0xb0] sm:$0xff] }
 0x4ba   : > { %1760 = vadd.xlane.f32.xlu0 %v1759_v31  ;;  %3394 = vmatpush3.bf16.msra.mxu1 %v3393_v25  ;;  %v1426_v21 = vmul.f32 %v3563_v35, %v1407_v36  ;;  %v2821_v25 = vld [vmem:[%s4457_s7 + $0xa8] sm:$0xff]  ;;  %v2823_v31 = vld [vmem:[%s4457_s7 + $0xb8] sm:$0xff] }
 0x4bb   : > { %3395 = vmatprep.subr.bf16.mxu1 %v3664_v3  ;;  %3173 = vmatprep.mubr.msk.f32.mxu1 %vm3665_vm0, %v3666_v6  ;;  %v3429_v27 = vpack.c.bf16 %v2821_v25, %v2820_v24  ;;  %v3432_v33 = vpack.c.bf16 %v2823_v31, %v2822_v29  ;;  %v2825_v36 = vld [vmem:[%s4457_s7 + $0xc8] sm:$0xff]  ;;  %v2838_v29 = vld [vmem:[%s4457_s7 + $0x130] sm:$0xff] }
 0x4be   : > { %3397 = vmatpush3.bf16.msra.mxu1 %v3396_v32  ;;  %v3411_v32 = vpack.c.bf16 %v2207_v28, %v2206_v26  ;;  %v2837_v26 = vld [vmem:[%s4457_s7 + $0x128] sm:$0xff] }
 0x4bf   : > { %3181 = vmatprep.subr.mxu1 %v3666_v6 }
 0x4c1   : > { %3174 = vmatmul.mubr.msk.f32.vlgmr.msra.gmra.mrb[16].mxu1 %vm520_vm1, %v3955_v56  ;;  %v1095_v56 = vsel %vm1076_vm5, %v4042_v39, 0.0 }
 0x4c2   : > { %3183 = vmatprep.mubr.msk.f32.mxu1 %vm3665_vm0, %v3666_v6 }
 0x506   : > { %v2076_v30 = vpop.xlane.xlu0 %2075 }
 0x507   : > { %v2077_v37 = vmax.f32 %v2069_v34, %v2076_v30  ;;  %v2824_v30 = vld [vmem:[%s4457_s7 + $0xc0] sm:$0xff] }
 0x509   : > { %2089 = vst.msk [vmem:[#allocation3 + $0x18] sm:$0xff] %vm826_vm2, %v2077_v37  ;;  %2083 = vperm.xlu1 %3555, %v2077_v37   ;;  %v2078_v41 = vsub.f32 %v2069_v34, %v2077_v37  ;;  %v2208_v34 = vld [vmem:[%s4457_s7 + $0x50] sm:$0xff] }
 0x50a   : > { %v1429_v38 = vpop.xlane.xlu0 %1428 }
 0x50b   : > { %v1430_v40 = vadd.f32 %v1429_v38, %v1426_v21  ;;  %v2079_v42 = vmul.f32 1.442695, %v2078_v41  ;;  %v3435_v21 = vpack.c.bf16 %v2825_v36, %v2824_v30  ;;  %v2210_v38 = vld [vmem:[%s4457_s7 + $0x60] sm:$0xff]  ;;  %v2826_v41 = vld [vmem:[%s4457_s7 + $0xd0] sm:$0xff] }
 0x50c   : > { %v2840_v30 = vld [vmem:[%s4457_s7 + $0x140] sm:$0xff] }
 0x50d   : > { %1431 = vst.msk [vmem:[#allocation4 + $0x8] sm:$0xff] %vm826_vm2, %v1430_v40  ;;  %3564 = vpow2.f32 %v2079_v42  ;;  %v2211_v40 = vld [vmem:[%s4457_s7 + $0x68] sm:$0xff]  ;;  %v2827_v42 = vld [vmem:[%s4457_s7 + $0xd8] sm:$0xff] }
 0x50e   : > { %3566 = vpow2.f32 %v1747_v43 }
 0x514   : > { %v2285_v43 = vld [vmem:[#allocation4 + $0x8] sm:$0xff] }
 0x517   : > { %v4134_v44 = vpop.eup %3564 }
 0x518   : > { %v4137_v45 = vpop.eup %3566  ;;  %v2090_v1 = vmul.f32 %v4134_v44, %v2071_v0 }
 0x519   : > { %v1758_v47 = vmul.f32 %v4137_v45, %v1739_v46  ;;  %v3417_v46 = vpack.c.bf16 %v2211_v40, %v2210_v38  ;;  %v2842_v40 = vld [vmem:[%s4457_s7 + $0x150] sm:$0xff] }
 0x52d   : > { %1096 = vadd.xlane.f32.xlu1 %v1095_v56 }
 0x53e   : > { %1434 = vperm.xlu1 %3555, %v3563_v35   ;;  %v2209_v35 = vld [vmem:[%s4457_s7 + $0x58] sm:$0xff] }
 0x53f   : > { %v3414_v37 = vpack.c.bf16 %v2209_v35, %v2208_v34  ;;  %v2853_v34 = vld [vmem:[%s4457_s7 + $0x1a8] sm:$0xff] }
 0x542   : > { %2098 = vperm.xlu1 %3555, %v4134_v44  }
 0x547   : > { %v1761_v48 = vpop.xlane.xlu0 %1760 }
 0x548   : > { %v1762_v49 = vadd.f32 %v1761_v48, %v1758_v47  ;;  %v3438_v47 = vpack.c.bf16 %v2827_v42, %v2826_v41  ;;  %v2212_v48 = vld [vmem:[%s4457_s7 + $0x70] sm:$0xff]  ;;  %v2843_v41 = vld [vmem:[%s4457_s7 + $0x158] sm:$0xff]  ;;  %v2856_v42 = vld [vmem:[%s4457_s7 + $0x1c0] sm:$0xff] }
 0x54a   : > { %1763 = vst.msk [vmem:[#allocation4 + $0x10] sm:$0xff] %vm826_vm2, %v1762_v49  ;;  %v2213_v49 = vld [vmem:[%s4457_s7 + $0x78] sm:$0xff] }
 0x588   : > { %v2084_v39 = vpop.permute.xlu1 %2083 }
 0x589   : > { %v2086_v50 = vsub.f32 %v4097_v10, %v2084_v39  ;;  %v2203_v10 = vld [vmem:[%s4457_s7 + $0x28] sm:$0xff]  ;;  %v2828_v39 = vld [vmem:[%s4457_s7 + $0xe0] sm:$0xff] }
 0x58a   : > { %v3405_v16 = vpack.c.bf16 %v2203_v10, %v2202_v9 }
 0x58b   : > { %v2087_v51 = vmul.f32 1.442695, %v2086_v50  ;;  %v2829_v50 = vld [vmem:[%s4457_s7 + $0xe8] sm:$0xff] }
 0x58c   : > { %v4142_v52 = vpop.f32.mrb[14].mxu1  ;;  %3406 = vmatpush3.bf16.msra.mxu0 %v3405_v16 }
 0x58d   : > { %3568 = vpow2.f32 %v2087_v51  ;;  %v3153_v53 = vpop.f32.mrb[15].mxu1  ;;  %3407 = vmatprep.subr.bf16.mxu0 %v3664_v3  ;;  %v3420_v51 = vpack.c.bf16 %v2213_v49, %v2212_v48  ;;  %v2845_v49 = vld [vmem:[%s4457_s7 + $0x168] sm:$0xff] }
 0x58e   : > { %3570 = vpow2.f32 %v1082_v61  ;;  %v3441_v53 = vpack.c.bf16 %v2829_v50, %v2828_v39  ;;  %v2858_v39 = vld [vmem:[%s4457_s7 + $0x1d0] sm:$0xff]  ;;  %v2859_v50 = vld [vmem:[%s4457_s7 + $0x1d8] sm:$0xff] }
 0x590   : > { %3409 = vmatpush3.bf16.msra.mxu0 %v3408_v23  ;;  %v2836_v23 = vld [vmem:[%s4457_s7 + $0x120] sm:$0xff] }
 0x591   : > { %3410 = vmatprep.subr.bf16.mxu0 %v3664_v3  ;;  %v3453_v28 = vpack.c.bf16 %v2837_v26, %v2836_v23  ;;  %v2180_v23 = vld [vmem:[%s3821_s26] sm:$0xff]  ;;  %s475_s26 = sand.u32 1, %s3646_s18  }
 0x592   : > { %s2758_s23 = sshll.u32 %s475_s26, 3  ;;  %s2617_s24 = scalar_lea.sflag [#allocation7], %s475_s26 }
 0x593   : > { %s477_s25 = scalar_lea.vmem [#allocation6], %s2758_s23  ;;  %s3588_s23 = sshll.u32 %s3669_s20, 4  ;;  %s3589_s23 = int_to_ptr.vmem [resolvable:$false] %s3588_s23 }
 0x594   : > { %v1991_v55 = vpop.f32.mrb[16].mxu1  ;;  %3412 = vmatpush3.bf16.msra.mxu0 %v3411_v32  ;;  %v2839_v32 = vld [vmem:[%s4457_s7 + $0x138] sm:$0xff]  ;;  %s2631_s13 = sshll.u32 %s477_s25, 4  ;;  %s3590_s16 = scalar_lea.vmem %s3589_s23, 256  ;;  %s4404_s13 = int_to_ptr.vmem [resolvable:$true] %s2631_s13 }
 0x595   : > { %3182 = vmatpush3.msra.mxu1 %v1991_v55  ;;  %v3175_v57 = vpop.f32.mrb[17].mxu1  ;;  %3413 = vmatprep.subr.bf16.mxu0 %v3664_v3  ;;  %v2382_v55 = vld [vmem:[#allocation4 + $0x10] sm:$0xff]  ;;  %v3456_v35 = vpack.c.bf16 %v2839_v32, %v2838_v29  ;;  %s3584_s28 = scalar_lea.vmem %s4404_s13, 128  ;;  %p3591_p1 = scmp.lt.s32.totalorder %s4404_s13, %s3589_s23 }
 0x596   : > { %3422 = vmatprep.subr.bf16.mxu1 %v3664_v3  ;;  %p3585_p12 = scmp.ne.s32.totalorder %s4404_s13, %s3584_s28  ;;  %p3592_p2 = scmp.lt.s32.totalorder %s3590_s16, %s3584_s28 }
 0x597   : > { %v3569_v58 = vpop.eup %3568 }
 0x598   : > { %3184 = vmatmul.mubr.msk.f32.vlgmr.msra.gmra.mrb[18].mxu1 %vm1076_vm5, %v3569_v58  ;;  %v2091_v59 = vsel %vm1076_vm5, %v3569_v58, 0.0  ;;  %v3571_v62 = vpop.eup %3570  ;;  %3415 = vmatpush3.bf16.msra.mxu0 %v3414_v37  ;;  %v2830_v58 = vld [vmem:[%s4457_s7 + $0xf0] sm:$0xff]  ;;  %v2841_v37 = vld [vmem:[%s4457_s7 + $0x148] sm:$0xff]  ;;  %p3586_p13 = pnand %p3585_p12, %p3770_p4  ;;  %p3593_p3 = por %p3592_p2, %p3591_p1 }
 0x599   : > { %2092 = vadd.xlane.f32.xlu0 %v2091_v59  ;;  %3253 = vmatprep.mubr.msk.f32.mxu1 %vm3665_vm0, %v3666_v6  ;;  %v1094_v17 = vmul.f32 %v3571_v62, %v1074_v15  ;;  %v2831_v59 = vld [vmem:[%s4457_s7 + $0xf8] sm:$0xff]  ;;  %v2834_v15 = vld [vmem:[%s4457_s7 + $0x110] sm:$0xff]  ;;  %v3459_v38 = vpack.c.bf16 %v2841_v37, %v2840_v30 }
 0x59a   : > { %3424 = vmatpush3.bf16.msra.mxu1 %v3423_v4  ;;  %3416 = vmatprep.subr.bf16.mxu0 %v3664_v3  ;;  %v3444_v61 = vpack.c.bf16 %v2831_v59, %v2830_v58  ;;  %v2847_v59 = vld [vmem:[%s4457_s7 + $0x178] sm:$0xff]  ;;  %p3587_p0 = pneg %p3586_p13 }
 0x59b   : > { %3425 = vmatprep.subr.bf16.mxu1 %v3664_v3 }
 0x59c   : > { %3418 = vmatpush3.bf16.msra.mxu0 %v3417_v46  ;;  %v3462_v46 = vpack.c.bf16 %v2843_v41, %v2842_v40  ;;  %v2864_v40 = vld [vmem:[%s4459_s9] ss:$0 sm:$0xff]  ;;  %p3594_p5 = pnand %p3593_p3, %p3587_p0 }
 0x59d   : > { %3419 = vmatprep.subr.bf16.mxu0 %v3664_v3  ;;  %v2865_v41 = vld [vmem:[%s4460_s10] ss:$0 sm:$0xff] }
 0x59e   : > { %3427 = vmatpush3.bf16.msra.mxu1 %v3426_v12 }
 0x59f   : > { %3428 = vmatprep.subr.bf16.mxu1 %v3664_v3 }
 0x5a0   : > { %3421 = vmatpush3.bf16.msra.mxu0 %v3420_v51 }
 0x5a1   : > { %3446 = vmatprep.subr.bf16.mxu0 %v3664_v3 }
 0x5a2   : > { %3430 = vmatpush3.bf16.msra.mxu1 %v3429_v27  ;;  %v2851_v27 = vld [vmem:[%s4457_s7 + $0x198] sm:$0xff] }
 0x5a3   : > { %3431 = vmatprep.subr.bf16.mxu1 %v3664_v3 }
 0x5a6   : > { %3433 = vmatpush3.bf16.msra.mxu1 %v3432_v33  ;;  %v2852_v33 = vld [vmem:[%s4457_s7 + $0x1a0] sm:$0xff] }
 0x5a7   : > { %3434 = vmatprep.subr.bf16.mxu1 %v3664_v3  ;;  %v3477_v36 = vpack.c.bf16 %v2853_v34, %v2852_v33 }
 0x5aa   : > { %3436 = vmatpush3.bf16.msra.mxu1 %v3435_v21  ;;  %v2855_v21 = vld [vmem:[%s4457_s7 + $0x1b8] sm:$0xff] }
 0x5ab   : > { %3437 = vmatprep.subr.bf16.mxu1 %v3664_v3 }
 0x5ae   : > { %3439 = vmatpush3.bf16.msra.mxu1 %v3438_v47  ;;  %v2844_v47 = vld [vmem:[%s4457_s7 + $0x160] sm:$0xff] }
 0x5af   : > { %1102 = vperm.xlu0 %3554, %v3571_v62   ;;  %3440 = vmatprep.subr.bf16.mxu1 %v3664_v3 }
 0x5b2   : > { %3442 = vmatpush3.bf16.msra.mxu1 %v3441_v53  ;;  %v3465_v53 = vpack.c.bf16 %v2845_v49, %v2844_v47 }
 0x5b3   : > { %3443 = vmatprep.subr.bf16.mxu1 %v3664_v3 }
 0x5b6   : > { %3445 = vmatpush3.bf16.msra.mxu1 %v3444_v61  ;;  %v2860_v61 = vld [vmem:[%s4457_s7 + $0x1e0] sm:$0xff] }
 0x5b7   : > { %3470 = vmatprep.subr.bf16.mxu1 %v3664_v3 }
 0x5ba   : > { %v1097_v18 = vpop.xlane.xlu1 %1096 }
 0x5bb   : > { %v1098_v19 = vadd.f32 %v1097_v18, %v1094_v17  ;;  %v2835_v17 = vld [vmem:[%s4457_s7 + $0x118] sm:$0xff]  ;;  %v2848_v18 = vld [vmem:[%s4457_s7 + $0x180] sm:$0xff] }
 0x5bc   : > { %v3450_v60 = vpack.c.bf16 %v2835_v17, %v2834_v15 }
 0x5bd   : > { %1099 = vst.msk [vmem:[#allocation4] sm:$0xff] %vm826_vm2, %v1098_v19  ;;  %v2849_v19 = vld [vmem:[%s4457_s7 + $0x188] sm:$0xff] }
 0x5be   : > { %v1435_v7 = vpop.permute.xlu1 %1434  ;;  %v3471_v24 = vpack.c.bf16 %v2849_v19, %v2848_v18 }
 0x5bf   : > { %v1437_v44 = vmul.f32 0.0, %v1435_v7 }
 0x5c4   : > { %v2189_v56 = vld [vmem:[#allocation4] sm:$0xff] }
 0x5c5   : > { %3572 = vrcp.f32 %v2189_v56 }
 0x5c6   : > { %3574 = vrcp.f32 %v2285_v43  ;;  %v2857_v43 = vld [vmem:[%s4457_s7 + $0x1c8] sm:$0xff] }
 0x5c7   : > { %3576 = vrcp.f32 %v2382_v55  ;;  %v3483_v48 = vpack.c.bf16 %v2857_v43, %v2856_v42  ;;  %v2846_v55 = vld [vmem:[%s4457_s7 + $0x170] sm:$0xff] }
 0x5c8   : > { %v3468_v0 = vpack.c.bf16 %v2847_v59, %v2846_v55 }
 0x5cf   : > { %v3573_v57 = vpop.eup %3572 }
 0x5d0   : > { %2194 = vperm.xlu0 %3554, %v3573_v57   ;;  %v3575_v62 = vpop.eup %3574  ;;  %v3486_v57 = vpack.c.bf16 %v2859_v50, %v2858_v39 }
 0x5d1   : > { %v3577_v63 = vpop.eup %3576 }
 0x5d4   : > { %2290 = vperm.xlu0 %3554, %v3575_v62   ;;  %v2861_v62 = vld [vmem:[%s4457_s7 + $0x1e8] sm:$0xff] }
 0x5d8   : > { %1766 = vperm.xlu0 %3554, %v4137_v45   ;;  %v2832_v45 = vld [vmem:[%s4457_s7 + $0x100] sm:$0xff] }
 0x5d9   : > { %v3447_v12 = vpack.c.bf16 %v2833_v8, %v2832_v45 }
 0x5dc   : > { %2387 = vperm.xlu0 %3554, %v3577_v63  }
 0x626   : > { %v2093_v2 = vpop.xlane.xlu0 %2092 }
 0x627   : > { %v2094_v11 = vadd.f32 %v2093_v2, %v2090_v1  ;;  %v3489_v1 = vpack.c.bf16 %v2861_v62, %v2860_v61 }
 0x629   : > { %2095 = vst.msk [vmem:[#allocation4 + $0x18] sm:$0xff] %vm826_vm2, %v2094_v11 }
 0x62e   : > { %v1103_v4 = vpop.permute.xlu0 %1102 }
 0x62f   : > { %v1105_v5 = vmul.f32 0.0, %v1103_v4 }
 0x630   : > { %v2479_v13 = vld [vmem:[#allocation4 + $0x18] sm:$0xff] }
 0x631   : > { %3578 = vrcp.f32 %v2479_v13  ;;  %v1179_v9 = vadd.f32 %v4070_v54, %v1105_v5  ;;  %v1511_v54 = vadd.f32 %v4102_v20, %v1437_v44  ;;  %v2850_v20 = vld [vmem:[%s4457_s7 + $0x190] sm:$0xff] }
 0x632   : > { %v3474_v31 = vpack.c.bf16 %v2851_v27, %v2850_v20  ;;  %v2862_v13 = vld [vmem:[%s4457_s7 + $0x1f0] sm:$0xff] }
 0x63b   : > { %v3579_v14 = vpop.eup %3578 }
 0x63c   : > { %2484 = vperm.xlu1 %3555, %v3579_v14   ;;  %v2863_v14 = vld [vmem:[%s4457_s7 + $0x1f8] sm:$0xff] }
 0x63d   : > { %v3492_v5 = vpack.c.bf16 %v2863_v14, %v2862_v13 }
 0x64f   : > { %v2195_v10 = vpop.permute.xlu0 %2194 }
 0x650   : > { %v2197_v16 = vmul.f32 %v2195_v10, %v1179_v9  ;;  %v2815_v10 = vld [vmem:[%s4458_s8] ss:$0 sm:$0xff] }
 0x652   : > { %3219 = vmatmul.mubr.f32.vlgmr.msra.gmra.mrb[20].mxu0 %v2197_v16 }
 0x653   : > { %3448 = vmatpush3.bf16.msra.mxu0 %v3447_v12  ;;  %v2291_v22 = vpop.permute.xlu0 %2290  ;;  %3288 = vmatprep.mubr.msk.f32.mxu0 %vm3665_vm0, %v3666_v6 }
 0x654   : > { %v2293_v25 = vmul.f32 %v2291_v22, %v1511_v54  ;;  %3449 = vmatprep.subr.bf16.mxu0 %v3664_v3 }
 0x656   : > { %3254 = vmatmul.mubr.f32.vlgmr.msra.gmra.mrb[20].mxu1 %v2293_v25 }
 0x657   : > { %3451 = vmatpush3.bf16.msra.mxu0 %v3450_v60  ;;  %3472 = vmatpush3.bf16.msra.mxu1 %v3471_v24  ;;  %v1767_v51 = vpop.permute.xlu0 %1766 }
 0x658   : > { %3452 = vmatprep.subr.bf16.mxu0 %v3664_v3  ;;  %3473 = vmatprep.subr.bf16.mxu1 %v3664_v3  ;;  %v1769_v58 = vmul.f32 0.0, %v1767_v51 }
 0x659   : > { %3323 = vmatprep.mubr.msk.f32.mxu1 %vm3665_vm0, %v3666_v6  ;;  %v2854_v6 = vld [vmem:[%s4457_s7 + $0x1b0] sm:$0xff] }
 0x65a   : > { %v3480_v56 = vpack.c.bf16 %v2855_v21, %v2854_v6  ;;  %v1843_v2 = vadd.f32 %v4142_v52, %v1769_v58  ;;  %v2099_v52 = vpop.permute.xlu1 %2098 }
 0x65b   : > { %3454 = vmatpush3.bf16.msra.mxu0 %v3453_v28  ;;  %3475 = vmatpush3.bf16.msra.mxu1 %v3474_v31  ;;  %v2388_v4 = vpop.permute.xlu0 %2387  ;;  %v2101_v45 = vmul.f32 0.0, %v2099_v52 }
 0x65c   : > { %3455 = vmatprep.subr.bf16.mxu0 %v3664_v3  ;;  %3476 = vmatprep.subr.bf16.mxu1 %v3664_v3  ;;  %v2390_v7 = vmul.f32 %v2388_v4, %v1843_v2 }
 0x65f   : > { %3457 = vmatpush3.bf16.msra.mxu0 %v3456_v35  ;;  %3478 = vmatpush3.bf16.msra.mxu1 %v3477_v36 }
 0x660   : > { %3458 = vmatprep.subr.bf16.mxu0 %v3664_v3  ;;  %3479 = vmatprep.subr.bf16.mxu1 %v3664_v3 }
 0x663   : > { %3460 = vmatpush3.bf16.msra.mxu0 %v3459_v38  ;;  %3481 = vmatpush3.bf16.msra.mxu1 %v3480_v56 }
 0x664   : > { %3461 = vmatprep.subr.bf16.mxu0 %v3664_v3  ;;  %3482 = vmatprep.subr.bf16.mxu1 %v3664_v3 }
 0x667   : > { %3463 = vmatpush3.bf16.msra.mxu0 %v3462_v46  ;;  %3484 = vmatpush3.bf16.msra.mxu1 %v3483_v48 }
 0x668   : > { %3464 = vmatprep.subr.bf16.mxu0 %v3664_v3  ;;  %3485 = vmatprep.subr.bf16.mxu1 %v3664_v3 }
 0x66b   : > { %3466 = vmatpush3.bf16.msra.mxu0 %v3465_v53  ;;  %v2171_v63 = vpop.f32.mrb[18].mxu1  ;;  %3487 = vmatpush3.bf16.msra.mxu1 %v3486_v57 }
 0x66c   : > { %v3185_v11 = vpop.f32.mrb[19].mxu1  ;;  %3467 = vmatprep.subr.bf16.mxu0 %v3664_v3  ;;  %3488 = vmatprep.subr.bf16.mxu1 %v3664_v3  ;;  %v2175_v8 = vadd.f32 %v2171_v63, %v2101_v45 }
 0x66f   : > { %3469 = vmatpush3.bf16.msra.mxu0 %v3468_v0  ;;  %3490 = vmatpush3.bf16.msra.mxu1 %v3489_v1 }
 0x670   : > { %3491 = vmatprep.subr.bf16.mxu1 %v3664_v3 }
 0x672   : > { %3289 = vmatmul.mubr.f32.vlgmr.msra.gmra.mrb[22].mxu0 %v2390_v7 }
 0x673   : > { %3493 = vmatpush3.bf16.msra.mxu1 %v3492_v5 }
 0x6bb   : > { %v2485_v44 = vpop.permute.xlu1 %2484 }
 0x6bc   : > { %v2487_v9 = vmul.f32 %v2485_v44, %v2175_v8 }
 0x6be   : > { %3324 = vmatmul.mubr.f32.vlgmr.msra.gmra.mrb[22].mxu1 %v2487_v9 }
 0x725   : > { %v2280_v12 = vpop.f32.mrb[20].mxu0 }
 0x726   : > { %v3220_v15 = vpop.f32.mrb[21].mxu0  ;;  %v2284_v16 = vadd.f32 %v2815_v10, %v2280_v12 }
 0x729   : > { %v2377_v17 = vpop.f32.mrb[20].mxu1 }
 0x72a   : > { %v2381_v18 = vadd.f32 %v2377_v17, %v2284_v16  ;;  %v3255_v19 = vpop.f32.mrb[21].mxu1 }
 0x745   : > { %v2474_v3 = vpop.f32.mrb[22].mxu0 }
 0x746   : > { %v2478_v54 = vadd.f32 %v2474_v3, %v2381_v18  ;;  %v3290_v22 = vpop.f32.mrb[23].mxu0 }
 0x791   : > { %v2571_v60 = vpop.f32.mrb[22].mxu1 }
 0x792   : > { %v2575_v24 = vadd.f32 %v2571_v60, %v2478_v54  ;;  %v3325_v25 = vpop.f32.mrb[23].mxu1 }
 0x794   : > { %v2576_v26 = vadd.f32 %v2575_v24, %v2180_v23 }
 0x796   : > { %v2577_v20 = vsel %vm520_vm1, %v2576_v26, 0.0 }
 0x797   : > { %2578 = vadd.xlane.f32.xlu0 %v2577_v20 }
 0x824   : > { %v2579_v27 = vpop.xlane.xlu0 %2578 }
 0x825   : > { %v2581_v28 = vmul.f32 0.03125, %v2579_v27 }
 0x827   : > { %v2582_v29 = vsub.f32 %v2576_v26, %v2581_v28 }
 0x829   : > { %v2583_v31 = vmul.f32 %v2582_v29, %v2582_v29 }
 0x82b   : > { %v2584_v32 = vsel %vm520_vm1, %v2583_v31, 0.0 }
 0x82c   : > { %2585 = vadd.xlane.f32.xlu1 %v2584_v32 }
 0x8b9   : > { %v2586_v33 = vpop.xlane.xlu1 %2585 }
 0x8ba   : > { %v2588_v34 = vmul.f32 0.032258064, %v2586_v33 }
 0x8bc   : > { %3580 = vrsqrt.f32 %v2588_v34  ;;  %vm2591_vm6 = vcmp.eq.f32.partialorder %v2588_v34, inf  ;;  %v2594_v36 = vand.u32 2147483648, %v2588_v34  ;;  %vm2593_vm7 = vcmp.eq.f32.partialorder %v2588_v34, 0.0 }
 0x8c6   : > { %v3581_v35 = vpop.eup %3580 }
 0x8c7   : > { %v2590_v30 = vmul.f32 %v3581_v35, %v2588_v34 }
 0x8c9   : > { %v2592_v37 = vsel %vm2591_vm6, %v2588_v34, %v2590_v30 }
 0x8ca   : > { %v2595_v6 = vsel %vm2593_vm7, %v2594_v36, %v2592_v37 }
 0x8cb   : > { %v2596_v21 = vadd.f32 0.001, %v2595_v6 }
 0x8cd   : > { %3582 = vrcp.f32 %v2596_v21 }
 0x8d7   : > { %v3583_v38 = vpop.eup %3582 }
 0x8d8   : > { %v2598_v56 = vmul.f32 %v3583_v38, %v2582_v29 }
 0x8da   : > { %v2606_v42 = vmul.f32 %v2864_v40, %v2598_v56 }
 0x8dc   : > { %v2614_v43 = vadd.f32 %v2865_v41, %v2606_v42 }
 0x8de   : > { %2615 = vst.msk [vmem:[%s477_s25] sm:$0xff] %vm520_vm1, %v2614_v43 }
 0x8df   : > { %3597 = shalt.err (!%p3594_p5)
}
 0x8e0   : > { %s3598_s26 = scalar_lea.hbm %s4402_s15, 128  ;;  %s3602_s25 = scalar_lea.hbm %s4461_s11, 256 }
 0x8e1   : > { %p3599_p6 = scmp.ne.s32.totalorder %s4402_s15, %s3598_s26  ;;  %p3603_p10 = scmp.lt.u32.totalorder %s4402_s15, %s4461_s11 }
 0x8e2   : > { %p3604_p11 = scmp.lt.u32.totalorder %s3602_s25, %s3598_s26  ;;  %p3606_p13 = scmp.lt.u32.totalorder %s3598_s26, %s4402_s15 }
 0x8e3   : > { %p3600_p7 = pnand %p3599_p6, %p3770_p4 }
 0x8e4   : > { %p3605_p12 = por %p3604_p11, %p3603_p10 }
 0x8e5   : > { %p3601_p9 = pneg %p3600_p7 }
 0x8e6   : > { %p3607_p0 = por %p3606_p13, %p3605_p12 }
 0x8e8   : > { %p3608_p1 = pnand %p3607_p0, %p3601_p9 }
 0x8ea   : > { %3611 = shalt.err (!%p3608_p1)
}
 0x8eb   : > { %3494 = dma.vmem_to_hbm [thread:$0]  (%p3770_p4), %s4404_s13, 128, %s4402_s15, %s2617_s24  }
 0x8ec PF: > { %p3500_p2 = scmp.ge.s32.totalorder %s3662_s22, 2  ;;  %s2643_s28 = sand.u32 1, %s3642_s17  }
 0x8ed   : > { %s2644_s20 = scalar_lea.sflag [#allocation7], %s2643_s28 }
 0x8ee   : > { %p3497_p3 = pnand %p3500_p2, %p3777_p8 }
 0x8f0   : > { %3637 = dma.done.wait (!%p3497_p3), %s2644_s20, 128  }
 0x8f1   : > { %3639 = vsyncadd (!%p3497_p3), %s2644_s20, 4294967168  ;;  %s24_s22 = sadd.s32 1, %s3662_s22   ;;  %s4472_s27 = sld [smem:[#allocation9_spill]] }
 0x8f2   : > { %p21_p5 = scmp.ge.s32.totalorder %s24_s22, 4   ;;  %s4473_s17 = smov %s3646_s18 }
 0x8f3   : > { %s4474_s18 = smov %s3650_s19  ;;  %s4475_s19 = smov %s3783_s30 }
 0x8f4   : > { %s4476_s20 = smov %s3658_s21  ;;  %23 = sbr.rel (!%p21_p5) target bundleno = 7 (0x7), region = 143 }
 0x8f7   : > { %s4477_s21 = smov %s4472_s27 }
 0x8fb   :  { %2649 = vsyncpa [#allocation7], 1 }
 0x8fc   :  { %2651 = vsyncpa [#allocation7 + $0x1], 1 }

</bundles_post_ra>
